<compile_context>
chip_gen: v7x
topology: tpu7x:2x2x1
jax: 0.10.0
libtpu: 0.0.40
codegen_flags: <defaults>
</compile_context>

<pallas_src>
import functools
import math

import jax
import jax.numpy as jnp
from jax.experimental import pallas as pl
from jax.experimental.pallas import tpu as pltpu

LEAKY_SLOPE = 0.01


def _activate(v, act):
    if act is None:
        return v
    if act == "relu":
        return jnp.maximum(v, 0.0)
    if act == "leaky_relu":
        return jnp.where(v >= 0, v, LEAKY_SLOPE * v)
    raise ValueError(f"unknown activation {act!r}")


# ---------------------------------------------------------------------------
# Kernel 1: generic dense  out = act(x @ w + b)  (used for the conv1 GEMM).
# ---------------------------------------------------------------------------
def _dense_kernel(x_ref, w_ref, b_ref, o_ref, *, act):
    w = w_ref[...]
    acc = jnp.dot(x_ref[...].astype(w.dtype), w,
                  preferred_element_type=jnp.float32)
    acc = acc + b_ref[...].astype(jnp.float32)
    o_ref[...] = _activate(acc, act).astype(o_ref.dtype)


def _pick_row_block(R, block_rows):
    """Row tile <= block_rows: multiple of 8 (or full extent); pad tail if needed."""
    if R <= block_rows:
        return R, R                                   # single full-extent block
    cap = block_rows - (block_rows % 8)
    for bm in range(cap, 7, -8):                      # largest multiple of 8 dividing R
        if R % bm == 0:
            return bm, R
    return cap, pl.cdiv(R, cap) * cap                 # pad the ragged row tail


def dense_bias_act(x, w, b, act=None, *, block_rows=512):
    """x:(R,K) @ w:(K,N) + b -> act(...), f32 accumulate, f32 output."""
    R, K = x.shape
    K2, N = w.shape
    assert K == K2
    b2 = jnp.asarray(b).reshape(1, N).astype(jnp.float32)

    bm, Rp = _pick_row_block(R, block_rows)
    if Rp != R:
        x = jnp.pad(x, ((0, Rp - R), (0, 0)))
    grid = (Rp // bm,)

    # Size the scoped VMEM limit to the real working set (double-buffered x/out
    # tiles + resident weight/bias) -- matters on v7x (64 MiB physical VMEM).
    vmem = (2 * bm * K * x.dtype.itemsize + K * N * w.dtype.itemsize
            + 2 * bm * N * 4 + N * 4 + (1 << 20))
    vmem = int(min(100 * 2 ** 20, max(32 * 2 ** 20, vmem)))

    out = pl.pallas_call(
        functools.partial(_dense_kernel, act=act),
        out_shape=jax.ShapeDtypeStruct((Rp, N), jnp.float32),
        grid_spec=pltpu.PrefetchScalarGridSpec(
            num_scalar_prefetch=0,
            grid=grid,
            in_specs=[
                pl.BlockSpec((bm, K), lambda i: (i, 0)),
                pl.BlockSpec((K, N), lambda i: (0, 0)),
                pl.BlockSpec((1, N), lambda i: (0, 0)),
            ],
            out_specs=pl.BlockSpec((bm, N), lambda i: (i, 0)),
        ),
        compiler_params=pltpu.CompilerParams(
            # megacore sharding only helps when there are >=2 independent steps
            dimension_semantics=(("parallel",) if grid[0] > 1 else ("arbitrary",)),
            vmem_limit_bytes=vmem),
    )(x, w, b2)
    return out[:R] if Rp != R else out


# ---------------------------------------------------------------------------
# Kernel 2: fused tail = conv2 + conv3 + UncertainNet MLP (+ kth-value).
# All intermediates stay in VMEM; one pallas_call, no grid.
# ---------------------------------------------------------------------------
def _fused_tail_kernel(p2_ref, w2_ref, b2_ref, w3_ref, b3_ref, w0_ref, b0_ref,
                       *rest, num_mid, ens_size, aggregate, k, beta):
    mid_refs = rest[:2 * num_mid]
    wl_ref = rest[2 * num_mid]
    bl_ref = rest[2 * num_mid + 1]
    o_ref = rest[2 * num_mid + 2]

    def dense(h, w_r, b_r, act):
        w = w_r[...]
        acc = jnp.dot(h.astype(w.dtype), w, preferred_element_type=jnp.float32)
        acc = acc + b_r[...].astype(jnp.float32)        # (1, N) broadcast, f32 VPU
        return _activate(acc, act)

    h = dense(p2_ref[...], w2_ref, b2_ref, "leaky_relu")    # conv2: (B, npos2*C2)
    h = dense(h, w3_ref, b3_ref, "leaky_relu")              # conv3: (B, C3) == flatten
    h = dense(h, w0_ref, b0_ref, "relu")                    # MLP layer 0 (expand, fused)
    for l in range(num_mid):                                # middle non-expand layers
        h = dense(h, mid_refs[2 * l], mid_refs[2 * l + 1], "relu")   # block-diagonal

    if not aggregate:
        # Block-diagonal last layer -> lane-contiguous (B, M*O); the wrapper
        # reshapes to (B, M, O).
        o_ref[...] = dense(h, wl_ref, bl_ref, None).astype(o_ref.dtype)
        return

    # Last layer per ensemble member (zero-padded per-member weights, so no
    # lane slicing is needed), then the kth-value quantile combine as a tiny
    # compare/select sorting network on the VPU -- no XLA sort, no extra launch.
    hl = h.astype(wl_ref.dtype)
    outs = []
    for m in range(ens_size):
        acc = jnp.dot(hl, wl_ref[m], preferred_element_type=jnp.float32)
        outs.append(acc + bl_ref[m].astype(jnp.float32))    # each (B, O)
    main = outs[0]
    vals = [o - main for o in outs[1:]]                     # L = ens - main
    n = len(vals)
    for i in range(n):                                      # bubble sorting network
        for j in range(n - 1 - i):
            lo = jnp.minimum(vals[j], vals[j + 1])
            hi = jnp.maximum(vals[j], vals[j + 1])
            vals[j], vals[j + 1] = lo, hi
    o_ref[...] = (main - beta * vals[k - 1]).astype(o_ref.dtype)


def _fused_tail(p2, prepped, *, aggregate, k=1, beta=0.0):
    cfg = prepped["cfg"]
    B = p2.shape[0]
    M, O = cfg["M"], cfg["O"]
    args = [p2, prepped["w2bd"], prepped["b2t"], prepped["w3g"], prepped["b3"],
            prepped["w0f"], prepped["b0f"]]
    for wbd, bb in prepped["mid"]:
        args += [wbd, bb]
    if aggregate:
        args += [prepped["wlast_pm"], prepped["blast_pm"]]
        out_shape = jax.ShapeDtypeStruct((B, O), jnp.float32)
    else:
        args += [prepped["wlast_bd"], prepped["blast_bd"]]
        out_shape = jax.ShapeDtypeStruct((B, M * O), jnp.float32)
    return pl.pallas_call(
        functools.partial(_fused_tail_kernel,
                          num_mid=len(prepped["mid"]), ens_size=M,
                          aggregate=aggregate, k=int(k), beta=float(beta)),
        out_shape=out_shape,
    )(*args)


# ---------------------------------------------------------------------------
# One-time parameter preparation (hoisted out of the forward path).
# ---------------------------------------------------------------------------
def _conv_out_hw(h, w, ksize, stride, pad):
    oh = (h + 2 * pad - (ksize - 1) - 1) // stride + 1
    ow = (w + 2 * pad - (ksize - 1) - 1) // stride + 1
    return oh, ow


def prepare_params(params, input_shape, ensemble_n, *, weight_dtype=jnp.float32):
    Cin, H, W = input_shape
    w1, b1 = params["conv1_w"], params["conv1_b"]
    w2, b2 = params["conv2_w"], params["conv2_b"]
    w3, b3 = params["conv3_w"], params["conv3_b"]
    C1, _, k1, _ = w1.shape
    C2, _, k2, _ = w2.shape
    C3, _, k3, _ = w3.shape
    s1 = _conv_out_hw(H, W, k1, 3, 4)
    s2 = _conv_out_hw(*s1, k2, 2, 0)
    s3 = _conv_out_hw(*s2, k3, 1, 0)
    # Fusing conv3 (and the NCHW flatten) into the tail kernel relies on:
    #   - conv3's kernel covering conv2's entire spatial output (one patch),
    #   - conv3's spatial output being 1x1 (flatten order is then layout-free).
    # TODO(synk): otherwise an extra im2col round trip (and NCHW flatten order)
    # would be required between conv2 and conv3.
    assert (k3, k3) == s2 and s3 == (1, 1), "fused tail assumes conv3 covers conv2"
    npos2 = s2[0] * s2[1]
    K2 = k2 * k2 * C1
    wd = weight_dtype

    # conv1 GEMM weight, patch order (Cin, kh, kw).
    w1g = w1.reshape(C1, Cin * k1 * k1).T.astype(wd)
    b1r = b1.reshape(1, C1).astype(jnp.float32)
    # conv2: one block-diagonal GEMM over all npos2 output positions; patch
    # order per position is (kh, kw, Cin); output lanes are (pos, Cout).
    w2g = jnp.transpose(w2, (2, 3, 1, 0)).reshape(K2, C2)
    w2bd = jax.scipy.linalg.block_diag(*([w2g] * npos2)).astype(wd)
    b2t = jnp.tile(b2.reshape(1, C2), (1, npos2)).astype(jnp.float32)
    # conv3 folded into a dense layer over the (pos-major, channel) conv2 lanes.
    w3g = jnp.transpose(w3, (2, 3, 1, 0)).reshape(k3 * k3 * C2, C3).astype(wd)
    b3r = b3.reshape(1, C3).astype(jnp.float32)

    ens_w, ens_b = params["ens_w"], params["ens_b"]
    M = ens_w[0].shape[0]
    assert M == ensemble_n + 1
    fc_in = ens_w[0].shape[1]
    assert fc_in == C3 * s3[0] * s3[1]
    O = ens_w[-1].shape[2]

    # Layer 0 (expand): shared input, member weights fused -> lane-dense (I, M*H1).
    w0 = ens_w[0]
    H1 = w0.shape[2]
    w0f = jnp.transpose(w0, (1, 0, 2)).reshape(fc_in, M * H1).astype(wd)
    b0f = ens_b[0].reshape(1, M * H1).astype(jnp.float32)
    # Middle non-expand layers: block-diagonal matmuls in (B, M*H) layout.
    mid = []
    for wm, bm_ in zip(ens_w[1:-1], ens_b[1:-1]):
        Ho = wm.shape[2]
        wbd = jax.scipy.linalg.block_diag(*[wm[m] for m in range(M)]).astype(wd)
        mid.append((wbd, bm_.reshape(1, M * Ho).astype(jnp.float32)))
    # Last layer, two prepared forms:
    #   block-diagonal (separate_ensemble path -> one (B, M*O) store), and
    #   per-member zero-padded (M, M*H, O) (aggregated path needs each member).
    wl, bl = ens_w[-1], ens_b[-1]
    Hl = wl.shape[1]
    wlast_bd = jax.scipy.linalg.block_diag(*[wl[m] for m in range(M)]).astype(wd)
    blast_bd = bl.reshape(1, M * O).astype(jnp.float32)
    wlast_pm = jnp.zeros((M, M * Hl, O), jnp.float32)
    for m in range(M):
        wlast_pm = wlast_pm.at[m, m * Hl:(m + 1) * Hl, :].set(wl[m])
    wlast_pm = wlast_pm.astype(wd)
    blast_pm = jnp.transpose(bl, (1, 0, 2)).astype(jnp.float32)     # (M, 1, O)

    cfg = dict(C1=C1, C2=C2, C3=C3, k1=k1, k2=k2, k3=k3,
               stride1=3, pad1=4, stride2=2,
               s1=s1, s2=s2, s3=s3, npos2=npos2, K2=K2,
               M=M, O=O, fc_in=fc_in, ensemble_n=ensemble_n)
    return dict(cfg=cfg, w1g=w1g, b1=b1r, w2bd=w2bd, b2t=b2t, w3g=w3g, b3=b3r,
                w0f=w0f, b0f=b0f, mid=mid,
                wlast_bd=wlast_bd, blast_bd=blast_bd,
                wlast_pm=wlast_pm, blast_pm=blast_pm)


# ---------------------------------------------------------------------------
# Patch extraction (plain XLA slicing; only the GEMMs run inside Pallas).
# ---------------------------------------------------------------------------
def _im2col_nchw(x, kh, kw, stride, padding):
    # TODO(synk): im2col is pure XLA slicing/reshapes; no clean Pallas win here.
    B, C, H, W = x.shape
    if padding:
        x = jnp.pad(x, ((0, 0), (0, 0), (padding, padding), (padding, padding)))
    Hp, Wp = H + 2 * padding, W + 2 * padding
    OH = (Hp - kh) // stride + 1
    OW = (Wp - kw) // stride + 1
    cols = [x[:, :, i:i + stride * OH:stride, j:j + stride * OW:stride]
            for i in range(kh) for j in range(kw)]
    p = jnp.stack(cols, axis=0).reshape(kh, kw, B, C, OH, OW)
    p = jnp.transpose(p, (2, 4, 5, 3, 0, 1))            # (B, OH, OW, C, kh, kw)
    return p.reshape(B * OH * OW, C * kh * kw), OH, OW


def _patches_nhwc(h, kh, kw, stride):
    B, H, W, C = h.shape
    OH = (H - kh) // stride + 1
    OW = (W - kw) // stride + 1
    cols = [h[:, i:i + stride * OH:stride, j:j + stride * OW:stride, :]
            for i in range(kh) for j in range(kw)]
    p = jnp.stack(cols, axis=0).reshape(kh, kw, B, OH, OW, C)
    p = jnp.transpose(p, (2, 3, 4, 0, 1, 5))            # (B, OH, OW, kh, kw, C)
    return p.reshape(B, OH * OW * kh * kw * C)


# ---------------------------------------------------------------------------
# UncertainConvNet forward.
# ---------------------------------------------------------------------------
def uncertain_conv_net_forward(x, prepped, *, separate_ensemble=False,
                               upperbound=False, alpha=None, beta=None,
                               squeeze_out=False):
    cfg = prepped["cfg"]
    B = x.shape[0]
    # conv1: im2col (XLA) + Pallas GEMM with fused bias + leaky_relu.
    p1, OH1, OW1 = _im2col_nchw(x, cfg["k1"], cfg["k1"], cfg["stride1"], cfg["pad1"])
    h1 = dense_bias_act(p1, prepped["w1g"], prepped["b1"], act="leaky_relu")
    # conv2 patches (channels-last, position-major lanes) feed the fused tail.
    h1 = h1.reshape(B, OH1, OW1, cfg["C1"])
    p2 = _patches_nhwc(h1, cfg["k2"], cfg["k2"], cfg["stride2"])    # (B, npos2*K2)

    M, O, ens_n = cfg["M"], cfg["O"], cfg["ensemble_n"]
    if separate_ensemble:
        out = _fused_tail(p2, prepped, aggregate=False).reshape(B, M, O)
        main_x, ens_x = out[:, 0], out[:, 1:]
        if squeeze_out:
            return main_x[..., 0], ens_x[..., 0]
        return main_x, ens_x

    if upperbound:
        k = 1 + int(alpha * ens_n)
    else:
        k = int((1.0 - alpha) * ens_n)
    # torch.kthvalue raises for k outside [1, ensemble_n]; clamp instead of
    # letting k-1 == -1 silently select the maximum.
    k = min(max(k, 1), ens_n)
    ans = _fused_tail(p2, prepped, aggregate=True, k=k, beta=float(beta))
    if squeeze_out:
        ans = ans[..., 0]
    return ans


# ---------------------------------------------------------------------------
# Pure-JAX reference (high precision) for verification.
# ---------------------------------------------------------------------------
def _leaky(v):
    return jnp.where(v >= 0, v, LEAKY_SLOPE * v)


def reference_forward(x, params, ensemble_n, *, separate_ensemble=False,
                      upperbound=False, alpha=None, beta=None):
    P = jax.lax.Precision.HIGHEST
    convs = [(params["conv1_w"], params["conv1_b"], 3, 4),
             (params["conv2_w"], params["conv2_b"], 2, 0),
             (params["conv3_w"], params["conv3_b"], 1, 0)]
    h = x
    for w, b, s, p in convs:
        h = jax.lax.conv_general_dilated(
            h, w, (s, s), ((p, p), (p, p)),
            dimension_numbers=("NCHW", "OIHW", "NCHW"), precision=P)
        h = _leaky(h + b.reshape(1, -1, 1, 1))
    h = h.reshape(h.shape[0], -1)
    ws, bs = params["ens_w"], params["ens_b"]
    h = jnp.maximum(jnp.einsum("bi,mio->bmo", h, ws[0], precision=P) + bs[0], 0.0)
    for w, b in zip(ws[1:-1], bs[1:-1]):
        h = jnp.maximum(jnp.einsum("bmi,mio->bmo", h, w, precision=P) + b, 0.0)
    h = jnp.einsum("bmi,mio->bmo", h, ws[-1], precision=P) + bs[-1]
    main_x, ens_x = h[:, 0], h[:, 1:]
    if separate_ensemble:
        return main_x, ens_x
    L = ens_x - main_x[:, None, :]
    k = (1 + int(alpha * ensemble_n)) if upperbound else int((1.0 - alpha) * ensemble_n)
    k = min(max(k, 1), ensemble_n)
    t = jnp.sort(L, axis=1)[:, k - 1, :]
    return main_x - beta * t


def conv2d_out_shape(in_shape, out_channels, kernel, stride, padding):
    H = math.floor((in_shape[-2] + 2.0 * padding - (kernel - 1.0) - 1.0) / stride + 1.0)
    W = math.floor((in_shape[-1] + 2.0 * padding - (kernel - 1.0) - 1.0) / stride + 1.0)
    return [out_channels, H, W]


if __name__ == "__main__":
    # UncertainConvNet(input_shape=(4,16,16), output_dim=3, ensemble_n=4,
    #                  layers=(8, 16, 32, 32))
    batch = 2
    input_shape = (4, 16, 16)
    output_dim = 3
    ensemble_n = 4
    layers = (8, 16, 32, 32)
    ens_size = 1 + ensemble_n
    alpha, beta = 0.25, 1.5

    s1 = conv2d_out_shape(input_shape, layers[0], 8, 3, 4)      # [8, 6, 6]
    s2 = conv2d_out_shape(s1, layers[1], 4, 2, 0)               # [16, 2, 2]
    s3 = conv2d_out_shape(s2, layers[2], 2, 1, 0)               # [32, 1, 1]
    fc_in = s3[0] * s3[1] * s3[2]

    key = jax.random.PRNGKey(0)
    keys = jax.random.split(key, 12)

    def uni(k, shape, fan_in):
        bound = 1.0 / math.sqrt(fan_in)
        return jax.random.uniform(k, shape, minval=-bound, maxval=bound,
                                  dtype=jnp.float32)

    params = {
        "conv1_w": uni(keys[0], (layers[0], input_shape[0], 8, 8), input_shape[0] * 64),
        "conv1_b": uni(keys[1], (layers[0],), input_shape[0] * 64),
        "conv2_w": uni(keys[2], (layers[1], layers[0], 4, 4), layers[0] * 16),
        "conv2_b": uni(keys[3], (layers[1],), layers[0] * 16),
        "conv3_w": uni(keys[4], (layers[2], layers[1], 2, 2), layers[1] * 4),
        "conv3_b": uni(keys[5], (layers[2],), layers[1] * 4),
    }
    fc_dims = (fc_in,) + tuple(layers[3:]) + (output_dim,)
    ens_w, ens_b, kidx = [], [], 6
    b5 = 1.0 / math.sqrt(5.0)
    for in_d, out_d in zip(fc_dims[:-1], fc_dims[1:]):
        ens_w.append(jax.random.uniform(keys[kidx], (ens_size, in_d, out_d),
                                        minval=-b5, maxval=b5, dtype=jnp.float32))
        ens_b.append(jax.random.uniform(keys[kidx + 1], (1, ens_size, out_d),
                                        minval=-b5, maxval=b5, dtype=jnp.float32))
        kidx += 2
    params["ens_w"] = ens_w
    params["ens_b"] = ens_b

    x = jax.random.normal(keys[kidx], (batch,) + input_shape, dtype=jnp.float32)

    # One-time parameter prep (all weight transforms hoisted out of forward).
    prepped = prepare_params(params, input_shape, ensemble_n)

    # 1) Default (quantile-aggregated) branch.
    fwd_agg = jax.jit(lambda xx: uncertain_conv_net_forward(
        xx, prepped, upperbound=False, alpha=alpha, beta=beta))
    out = jax.block_until_ready(fwd_agg(x))
    ref = reference_forward(x, params, ensemble_n, upperbound=False,
                            alpha=alpha, beta=beta)
    assert out.shape == (batch, output_dim), out.shape
    assert jnp.allclose(out, ref, atol=5e-3, rtol=5e-3), \
        float(jnp.max(jnp.abs(out - ref)))

    # 2) Upperbound branch (different k).
    out_ub = jax.block_until_ready(uncertain_conv_net_forward(
        x, prepped, upperbound=True, alpha=alpha, beta=beta))
    ref_ub = reference_forward(x, params, ensemble_n, upperbound=True,
                               alpha=alpha, beta=beta)
    assert jnp.allclose(out_ub, ref_ub, atol=5e-3, rtol=5e-3)

    # 3) separate_ensemble branch.
    fwd_sep = jax.jit(lambda xx: uncertain_conv_net_forward(
        xx, prepped, separate_ensemble=True))
    main_o, ens_o = jax.block_until_ready(fwd_sep(x))
    main_r, ens_r = reference_forward(x, params, ensemble_n, separate_ensemble=True)
    assert main_o.shape == (batch, output_dim)
    assert ens_o.shape == (batch, ensemble_n, output_dim)
    assert jnp.allclose(main_o, main_r, atol=5e-3, rtol=5e-3)
    assert jnp.allclose(ens_o, ens_r, atol=5e-3, rtol=5e-3)

    # 4) bf16-weight variant (weights pre-cast ONCE at prep; f32 accumulate/IO).
    prepped_bf16 = prepare_params(params, input_shape, ensemble_n,
                                  weight_dtype=jnp.bfloat16)
    out_bf = jax.block_until_ready(uncertain_conv_net_forward(
        x, prepped_bf16, upperbound=False, alpha=alpha, beta=beta))
    assert bool(jnp.all(jnp.isfinite(out_bf)))
    assert jnp.allclose(out_bf, ref, atol=0.15, rtol=0.15), \
        float(jnp.max(jnp.abs(out_bf - ref)))

    print("KERNEL_OK")
</pallas_src>

<mosaic_0001>
module attributes {stable_mosaic.version = 11 : i64} {
  func.func @_dense_kernel(%arg0: i32, %arg1: memref<72x256xf32, #tpu.memory_space<vmem>>, %arg2: memref<256x8xf32, #tpu.memory_space<vmem>>, %arg3: memref<1x8xf32, #tpu.memory_space<vmem>>, %arg4: memref<72x8xf32, #tpu.memory_space<vmem>>) attributes {dimension_semantics = [#tpu.dimension_semantics<arbitrary>], iteration_bounds = array<i64: 1>, scalar_prefetch = 0 : i64, scratch_operands = 0 : i64, tpu.core_type = #tpu.core_type<tc>, window_params = [{transform_indices = @transform_0, window_bounds = array<i64: 72, 256>}, {pipeline_mode = #tpu.pipeline_mode<synchronous>, transform_indices = @transform_1, window_bounds = array<i64: 256, 8>}, {pipeline_mode = #tpu.pipeline_mode<synchronous>, transform_indices = @transform_2, window_bounds = array<i64: 1, 8>}, {transform_indices = @transform_3, window_bounds = array<i64: 72, 8>}]} {
    %c0 = arith.constant 0 : index
    %c0_0 = arith.constant 0 : index
    %0 = vector.load %arg2[%c0, %c0_0] : memref<256x8xf32, #tpu.memory_space<vmem>>, vector<256x8xf32>
    %c0_1 = arith.constant 0 : index
    %c0_2 = arith.constant 0 : index
    %1 = vector.load %arg1[%c0_1, %c0_2] : memref<72x256xf32, #tpu.memory_space<vmem>>, vector<72x256xf32>
    %cst = arith.constant dense<0.000000e+00> : vector<72x8xf32>
    %2 = tpu.matmul %1, %0, %cst {dimension_numbers = #tpu.dot_dimension_numbers<[1], [0], [0], [1], [0, 0, 1, 1], [], []>} : vector<72x256xf32>, vector<256x8xf32>, vector<72x8xf32> -> vector<72x8xf32>
    %c0_3 = arith.constant 0 : index
    %c0_4 = arith.constant 0 : index
    %3 = vector.load %arg3[%c0_3, %c0_4] : memref<1x8xf32, #tpu.memory_space<vmem>>, vector<1x8xf32>
    %4 = vector.broadcast %3 : vector<1x8xf32> to vector<72x8xf32>
    %5 = arith.addf %2, %4 : vector<72x8xf32>
    %cst_5 = arith.constant 0.000000e+00 : f32
    %6 = vector.broadcast %cst_5 : f32 to vector<72x8xf32>
    %7 = arith.cmpf oge, %5, %6 : vector<72x8xf32>
    %cst_6 = arith.constant 0.00999999977 : f32
    %8 = vector.broadcast %cst_6 : f32 to vector<72x8xf32>
    %9 = arith.mulf %8, %5 : vector<72x8xf32>
    %10 = arith.select %7, %5, %9 : vector<72x8xi1>, vector<72x8xf32>
    %c0_7 = arith.constant 0 : index
    %c0_8 = arith.constant 0 : index
    %11 = vector.load %arg4[%c0_7, %c0_8] : memref<72x8xf32, #tpu.memory_space<vmem>>, vector<72x8xf32>
    tpu.vector_store %arg4[%c0_7, %c0_8], %10 {strides = array<i32>} : memref<72x8xf32, #tpu.memory_space<vmem>>, vector<72x8xf32>,
    return
  }
  func.func @transform_0(%arg0: i32) -> (i32, i32) {
    %c0_i32 = arith.constant 0 : i32
    %c0_i32_0 = arith.constant 0 : i32
    return %arg0, %c0_i32 : i32, i32
  }
  func.func @transform_1(%arg0: i32) -> (i32, i32) {
    %c0_i32 = arith.constant 0 : i32
    %c0_i32_0 = arith.constant 0 : i32
    %c0_i32_1 = arith.constant 0 : i32
    return %c0_i32, %c0_i32_0 : i32, i32
  }
  func.func @transform_2(%arg0: i32) -> (i32, i32) {
    %c0_i32 = arith.constant 0 : i32
    %c0_i32_0 = arith.constant 0 : i32
    %c0_i32_1 = arith.constant 0 : i32
    return %c0_i32, %c0_i32_0 : i32, i32
  }
  func.func @transform_3(%arg0: i32) -> (i32, i32) {
    %c0_i32 = arith.constant 0 : i32
    %c0_i32_0 = arith.constant 0 : i32
    return %arg0, %c0_i32 : i32, i32
  }
}

module attributes {stable_mosaic.version = 11 : i64} {
  func.func @_fused_tail_kernel(%arg0: memref<2x512xf32, #tpu.memory_space<vmem>>, %arg1: memref<512x64xf32, #tpu.memory_space<vmem>>, %arg2: memref<1x64xf32, #tpu.memory_space<vmem>>, %arg3: memref<64x32xf32, #tpu.memory_space<vmem>>, %arg4: memref<1x32xf32, #tpu.memory_space<vmem>>, %arg5: memref<32x160xf32, #tpu.memory_space<vmem>>, %arg6: memref<1x160xf32, #tpu.memory_space<vmem>>, %arg7: memref<5x160x3xf32, #tpu.memory_space<vmem>>, %arg8: memref<5x1x3xf32, #tpu.memory_space<vmem>>, %arg9: memref<2x3xf32, #tpu.memory_space<vmem>>) attributes {dimension_semantics = [], scalar_prefetch = 0 : i64, scratch_operands = 0 : i64, tpu.core_type = #tpu.core_type<tc>} {
    %c0 = arith.constant 0 : index
    %c0_0 = arith.constant 0 : index
    %0 = vector.load %arg0[%c0, %c0_0] : memref<2x512xf32, #tpu.memory_space<vmem>>, vector<2x512xf32>
    %c0_1 = arith.constant 0 : index
    %c0_2 = arith.constant 0 : index
    %1 = vector.load %arg1[%c0_1, %c0_2] : memref<512x64xf32, #tpu.memory_space<vmem>>, vector<512x64xf32>
    %cst = arith.constant dense<0.000000e+00> : vector<2x64xf32>
    %2 = tpu.matmul %0, %1, %cst {dimension_numbers = #tpu.dot_dimension_numbers<[1], [0], [0], [1], [0, 0, 1, 1], [], []>} : vector<2x512xf32>, vector<512x64xf32>, vector<2x64xf32> -> vector<2x64xf32>
    %c0_3 = arith.constant 0 : index
    %c0_4 = arith.constant 0 : index
    %3 = vector.load %arg2[%c0_3, %c0_4] : memref<1x64xf32, #tpu.memory_space<vmem>>, vector<1x64xf32>
    %4 = vector.broadcast %3 : vector<1x64xf32> to vector<2x64xf32>
    %5 = arith.addf %2, %4 : vector<2x64xf32>
    %cst_5 = arith.constant 0.000000e+00 : f32
    %6 = vector.broadcast %cst_5 : f32 to vector<2x64xf32>
    %7 = arith.cmpf oge, %5, %6 : vector<2x64xf32>
    %cst_6 = arith.constant 0.00999999977 : f32
    %8 = vector.broadcast %cst_6 : f32 to vector<2x64xf32>
    %9 = arith.mulf %8, %5 : vector<2x64xf32>
    %10 = arith.select %7, %5, %9 : vector<2x64xi1>, vector<2x64xf32>
    %c0_7 = arith.constant 0 : index
    %c0_8 = arith.constant 0 : index
    %11 = vector.load %arg3[%c0_7, %c0_8] : memref<64x32xf32, #tpu.memory_space<vmem>>, vector<64x32xf32>
    %cst_9 = arith.constant dense<0.000000e+00> : vector<2x32xf32>
    %12 = tpu.matmul %10, %11, %cst_9 {dimension_numbers = #tpu.dot_dimension_numbers<[1], [0], [0], [1], [0, 0, 1, 1], [], []>} : vector<2x64xf32>, vector<64x32xf32>, vector<2x32xf32> -> vector<2x32xf32>
    %c0_10 = arith.constant 0 : index
    %c0_11 = arith.constant 0 : index
    %13 = vector.load %arg4[%c0_10, %c0_11] : memref<1x32xf32, #tpu.memory_space<vmem>>, vector<1x32xf32>
    %14 = vector.broadcast %13 : vector<1x32xf32> to vector<2x32xf32>
    %15 = arith.addf %12, %14 : vector<2x32xf32>
    %cst_12 = arith.constant 0.000000e+00 : f32
    %16 = vector.broadcast %cst_12 : f32 to vector<2x32xf32>
    %17 = arith.cmpf oge, %15, %16 : vector<2x32xf32>
    %cst_13 = arith.constant 0.00999999977 : f32
    %18 = vector.broadcast %cst_13 : f32 to vector<2x32xf32>
    %19 = arith.mulf %18, %15 : vector<2x32xf32>
    %20 = arith.select %17, %15, %19 : vector<2x32xi1>, vector<2x32xf32>
    %c0_14 = arith.constant 0 : index
    %c0_15 = arith.constant 0 : index
    %21 = vector.load %arg5[%c0_14, %c0_15] : memref<32x160xf32, #tpu.memory_space<vmem>>, vector<32x160xf32>
    %cst_16 = arith.constant dense<0.000000e+00> : vector<2x160xf32>
    %22 = tpu.matmul %20, %21, %cst_16 {dimension_numbers = #tpu.dot_dimension_numbers<[1], [0], [0], [1], [0, 0, 1, 1], [], []>} : vector<2x32xf32>, vector<32x160xf32>, vector<2x160xf32> -> vector<2x160xf32>
    %c0_17 = arith.constant 0 : index
    %c0_18 = arith.constant 0 : index
    %23 = vector.load %arg6[%c0_17, %c0_18] : memref<1x160xf32, #tpu.memory_space<vmem>>, vector<1x160xf32>
    %24 = vector.broadcast %23 : vector<1x160xf32> to vector<2x160xf32>
    %25 = arith.addf %22, %24 : vector<2x160xf32>
    %cst_19 = arith.constant 0.000000e+00 : f32
    %26 = vector.broadcast %cst_19 : f32 to vector<2x160xf32>
    %27 = arith.maximumf %25, %26 : vector<2x160xf32>
    %c0_20 = arith.constant 0 : index
    %c0_21 = arith.constant 0 : index
    %c0_22 = arith.constant 0 : index
    %28 = vector.load %arg7[%c0_20, %c0_21, %c0_22] : memref<5x160x3xf32, #tpu.memory_space<vmem>>, vector<1x160x3xf32>
    %29 = vector.shape_cast %28 : vector<1x160x3xf32> to vector<160x3xf32>
    %cst_23 = arith.constant dense<0.000000e+00> : vector<2x3xf32>
    %30 = tpu.matmul %27, %29, %cst_23 {dimension_numbers = #tpu.dot_dimension_numbers<[1], [0], [0], [1], [0, 0, 1, 1], [], []>} : vector<2x160xf32>, vector<160x3xf32>, vector<2x3xf32> -> vector<2x3xf32>
    %c0_24 = arith.constant 0 : index
    %c0_25 = arith.constant 0 : index
    %c0_26 = arith.constant 0 : index
    %31 = vector.load %arg8[%c0_24, %c0_25, %c0_26] : memref<5x1x3xf32, #tpu.memory_space<vmem>>, vector<1x1x3xf32>
    %32 = vector.shape_cast %31 : vector<1x1x3xf32> to vector<1x3xf32>
    %33 = vector.broadcast %32 : vector<1x3xf32> to vector<2x3xf32>
    %34 = arith.addf %30, %33 : vector<2x3xf32>
    %c1 = arith.constant 1 : index
    %c0_27 = arith.constant 0 : index
    %c0_28 = arith.constant 0 : index
    %35 = vector.load %arg7[%c1, %c0_27, %c0_28] : memref<5x160x3xf32, #tpu.memory_space<vmem>>, vector<1x160x3xf32>
    %36 = vector.shape_cast %35 : vector<1x160x3xf32> to vector<160x3xf32>
    %cst_29 = arith.constant dense<0.000000e+00> : vector<2x3xf32>
    %37 = tpu.matmul %27, %36, %cst_29 {dimension_numbers = #tpu.dot_dimension_numbers<[1], [0], [0], [1], [0, 0, 1, 1], [], []>} : vector<2x160xf32>, vector<160x3xf32>, vector<2x3xf32> -> vector<2x3xf32>
    %c1_30 = arith.constant 1 : index
    %c0_31 = arith.constant 0 : index
    %c0_32 = arith.constant 0 : index
    %38 = vector.load %arg8[%c1_30, %c0_31, %c0_32] : memref<5x1x3xf32, #tpu.memory_space<vmem>>, vector<1x1x3xf32>
    %39 = vector.shape_cast %38 : vector<1x1x3xf32> to vector<1x3xf32>
    %40 = vector.broadcast %39 : vector<1x3xf32> to vector<2x3xf32>
    %41 = arith.addf %37, %40 : vector<2x3xf32>
    %c2 = arith.constant 2 : index
    %c0_33 = arith.constant 0 : index
    %c0_34 = arith.constant 0 : index
    %42 = vector.load %arg7[%c2, %c0_33, %c0_34] : memref<5x160x3xf32, #tpu.memory_space<vmem>>, vector<1x160x3xf32>
    %43 = vector.shape_cast %42 : vector<1x160x3xf32> to vector<160x3xf32>
    %cst_35 = arith.constant dense<0.000000e+00> : vector<2x3xf32>
    %44 = tpu.matmul %27, %43, %cst_35 {dimension_numbers = #tpu.dot_dimension_numbers<[1], [0], [0], [1], [0, 0, 1, 1], [], []>} : vector<2x160xf32>, vector<160x3xf32>, vector<2x3xf32> -> vector<2x3xf32>
    %c2_36 = arith.constant 2 : index
    %c0_37 = arith.constant 0 : index
    %c0_38 = arith.constant 0 : index
    %45 = vector.load %arg8[%c2_36, %c0_37, %c0_38] : memref<5x1x3xf32, #tpu.memory_space<vmem>>, vector<1x1x3xf32>
    %46 = vector.shape_cast %45 : vector<1x1x3xf32> to vector<1x3xf32>
    %47 = vector.broadcast %46 : vector<1x3xf32> to vector<2x3xf32>
    %48 = arith.addf %44, %47 : vector<2x3xf32>
    %c3 = arith.constant 3 : index
    %c0_39 = arith.constant 0 : index
    %c0_40 = arith.constant 0 : index
    %49 = vector.load %arg7[%c3, %c0_39, %c0_40] : memref<5x160x3xf32, #tpu.memory_space<vmem>>, vector<1x160x3xf32>
    %50 = vector.shape_cast %49 : vector<1x160x3xf32> to vector<160x3xf32>
    %cst_41 = arith.constant dense<0.000000e+00> : vector<2x3xf32>
    %51 = tpu.matmul %27, %50, %cst_41 {dimension_numbers = #tpu.dot_dimension_numbers<[1], [0], [0], [1], [0, 0, 1, 1], [], []>} : vector<2x160xf32>, vector<160x3xf32>, vector<2x3xf32> -> vector<2x3xf32>
    %c3_42 = arith.constant 3 : index
    %c0_43 = arith.constant 0 : index
    %c0_44 = arith.constant 0 : index
    %52 = vector.load %arg8[%c3_42, %c0_43, %c0_44] : memref<5x1x3xf32, #tpu.memory_space<vmem>>, vector<1x1x3xf32>
    %53 = vector.shape_cast %52 : vector<1x1x3xf32> to vector<1x3xf32>
    %54 = vector.broadcast %53 : vector<1x3xf32> to vector<2x3xf32>
    %55 = arith.addf %51, %54 : vector<2x3xf32>
    %c4 = arith.constant 4 : index
    %c0_45 = arith.constant 0 : index
    %c0_46 = arith.constant 0 : index
    %56 = vector.load %arg7[%c4, %c0_45, %c0_46] : memref<5x160x3xf32, #tpu.memory_space<vmem>>, vector<1x160x3xf32>
    %57 = vector.shape_cast %56 : vector<1x160x3xf32> to vector<160x3xf32>
    %cst_47 = arith.constant dense<0.000000e+00> : vector<2x3xf32>
    %58 = tpu.matmul %27, %57, %cst_47 {dimension_numbers = #tpu.dot_dimension_numbers<[1], [0], [0], [1], [0, 0, 1, 1], [], []>} : vector<2x160xf32>, vector<160x3xf32>, vector<2x3xf32> -> vector<2x3xf32>
    %c4_48 = arith.constant 4 : index
    %c0_49 = arith.constant 0 : index
    %c0_50 = arith.constant 0 : index
    %59 = vector.load %arg8[%c4_48, %c0_49, %c0_50] : memref<5x1x3xf32, #tpu.memory_space<vmem>>, vector<1x1x3xf32>
    %60 = vector.shape_cast %59 : vector<1x1x3xf32> to vector<1x3xf32>
    %61 = vector.broadcast %60 : vector<1x3xf32> to vector<2x3xf32>
    %62 = arith.addf %58, %61 : vector<2x3xf32>
    %63 = arith.subf %41, %34 : vector<2x3xf32>
    %64 = arith.subf %48, %34 : vector<2x3xf32>
    %65 = arith.subf %55, %34 : vector<2x3xf32>
    %66 = arith.subf %62, %34 : vector<2x3xf32>
    %67 = arith.minimumf %63, %64 : vector<2x3xf32>
    %68 = arith.maximumf %63, %64 : vector<2x3xf32>
    %69 = arith.minimumf %68, %65 : vector<2x3xf32>
    %70 = arith.maximumf %68, %65 : vector<2x3xf32>
    %71 = arith.minimumf %70, %66 : vector<2x3xf32>
    %72 = arith.maximumf %67, %69 : vector<2x3xf32>
    %73 = arith.maximumf %72, %71 : vector<2x3xf32>
    %cst_51 = arith.constant 1.500000e+00 : f32
    %74 = vector.broadcast %cst_51 : f32 to vector<2x3xf32>
    %75 = arith.mulf %74, %73 : vector<2x3xf32>
    %76 = arith.subf %34, %75 : vector<2x3xf32>
    %c0_52 = arith.constant 0 : index
    %c0_53 = arith.constant 0 : index
    %77 = vector.load %arg9[%c0_52, %c0_53] : memref<2x3xf32, #tpu.memory_space<vmem>>, vector<2x3xf32>
    tpu.vector_store %arg9[%c0_52, %c0_53], %76 {strides = array<i32>} : memref<2x3xf32, #tpu.memory_space<vmem>>, vector<2x3xf32>,
    return
  }
}

</mosaic_0001>

<bundles_post_ra>
// kernel: _lambda_.2
= control target key start
LH: loop header
LB: loop body
LE: loop exit
PB: predicated region body
PF: predicated region fallthrough
CT: control target
= control target key end

     0   :  { %vm208_vm0 = vcmask 64512   ;;  %s550_s1 = inlined_call_operand.vmem [shape: f32[256,8], index: 1, kind: input, shape index: {}]   ;;  %s551_s0 = inlined_call_operand.vmem [shape: f32[72,256], index: 0, kind: input, shape index: {}]   ;;  %s552_s2 = inlined_call_operand.vmem [shape: f32[1,8], index: 2, kind: input, shape index: {}]   ;;  %s553_s3 = inlined_call_operand.vmem [shape: f32[72,8], index: 3, kind: output, shape index: {}]  }
   0x1   :  { %v30_v0 = vld [vmem:[%s550_s1 + $0x80] sm:$0xff]  ;;  %v31_v1 = vld [vmem:[%s550_s1 + $0x88] sm:$0xff]  ;;  %v32_v5 = vld [vmem:[%s550_s1 + $0x90] sm:$0xff] }
   0x2   :  { %v14_v2 = vld [vmem:[%s550_s1] sm:$0xff]  ;;  %v282_v3 = vpack.c.bf16 %v31_v1, %v30_v0  ;;  %v15_v4 = vld [vmem:[%s550_s1 + $0x8] sm:$0xff]  ;;  %v33_v6 = vld [vmem:[%s550_s1 + $0x98] sm:$0xff] }
   0x3   :  { %v284_v7 = vpack.c.bf16 %v15_v4, %v14_v2  ;;  %v286_v8 = vpack.c.bf16 %v33_v6, %v32_v5  ;;  %v16_v9 = vld [vmem:[%s550_s1 + $0x10] sm:$0xff]  ;;  %v17_v10 = vld [vmem:[%s550_s1 + $0x18] sm:$0xff]  ;;  %v34_v11 = vld [vmem:[%s550_s1 + $0xa0] sm:$0xff] }
   0x4   :  { %283 = vmatprep.subr.bf16.mxu0 %v282_v3  ;;  %314 = vmatprep.subr.bf16.mxu1 %v282_v3  ;;  %v35_v12 = vld [vmem:[%s550_s1 + $0xa8] sm:$0xff]  ;;  %v288_v13 = vpack.c.bf16 %v17_v10, %v16_v9  ;;  %v18_v15 = vld [vmem:[%s550_s1 + $0x20] sm:$0xff]  ;;  %v36_v17 = vld [vmem:[%s550_s1 + $0xb0] sm:$0xff] }
   0x5   :  { %285 = vmatpush3.bf16.msra.mxu0 %v284_v7  ;;  %322 = vmatpush3.bf16.msra.mxu1 %v284_v7  ;;  %v290_v14 = vpack.c.bf16 %v35_v12, %v34_v11  ;;  %v19_v16 = vld [vmem:[%s550_s1 + $0x28] sm:$0xff]  ;;  %v37_v18 = vld [vmem:[%s550_s1 + $0xb8] sm:$0xff]  ;;  %v20_v21 = vld [vmem:[%s550_s1 + $0x30] sm:$0xff] }
   0x6   :  { %287 = vmatprep.subr.bf16.mxu0 %v286_v8  ;;  %315 = vmatprep.subr.bf16.mxu1 %v286_v8  ;;  %v292_v19 = vpack.c.bf16 %v19_v16, %v18_v15  ;;  %v294_v20 = vpack.c.bf16 %v37_v18, %v36_v17  ;;  %v21_v22 = vld [vmem:[%s550_s1 + $0x38] sm:$0xff]  ;;  %v38_v23 = vld [vmem:[%s550_s1 + $0xc0] sm:$0xff]  ;;  %v39_v24 = vld [vmem:[%s550_s1 + $0xc8] sm:$0xff] }
   0x7   :  { %v47_v25 = vld [vmem:[%s551_s0 + $0x8] sm:$0xff]  ;;  %v57_v26 = vld [vmem:[%s551_s0 + $0x58] sm:$0xff]  ;;  %v296_v27 = vpack.c.bf16 %v21_v22, %v20_v21  ;;  %v298_v28 = vpack.c.bf16 %v39_v24, %v38_v23  ;;  %v22_v29 = vld [vmem:[%s550_s1 + $0x40] sm:$0xff] }
   0x8   :  { %135 = vmatprep.mubr.f32.mxu0 %v47_v25  ;;  %v23_v30 = vld [vmem:[%s550_s1 + $0x48] sm:$0xff]  ;;  %v40_v31 = vld [vmem:[%s550_s1 + $0xd0] sm:$0xff]  ;;  %v41_v32 = vld [vmem:[%s550_s1 + $0xd8] sm:$0xff]  ;;  %160 = vmatprep.mubr.f32.mxu1 %v57_v26 }
   0x9   :  { %289 = vmatpush3.bf16.msra.mxu0 %v288_v13  ;;  %323 = vmatpush3.bf16.msra.mxu1 %v288_v13  ;;  %v300_v33 = vpack.c.bf16 %v23_v30, %v22_v29  ;;  %v302_v34 = vpack.c.bf16 %v41_v32, %v40_v31  ;;  %v24_v35 = vld [vmem:[%s550_s1 + $0x50] sm:$0xff]  ;;  %v25_v36 = vld [vmem:[%s550_s1 + $0x58] sm:$0xff]  ;;  %v42_v37 = vld [vmem:[%s550_s1 + $0xe0] sm:$0xff] }
   0xa   :  { %291 = vmatprep.subr.bf16.mxu0 %v290_v14  ;;  %316 = vmatprep.subr.bf16.mxu1 %v290_v14  ;;  %v43_v38 = vld [vmem:[%s550_s1 + $0xe8] sm:$0xff]  ;;  %v304_v39 = vpack.c.bf16 %v25_v36, %v24_v35  ;;  %v26_v41 = vld [vmem:[%s550_s1 + $0x60] sm:$0xff]  ;;  %v44_v43 = vld [vmem:[%s550_s1 + $0xf0] sm:$0xff] }
   0xb   :  { %v306_v40 = vpack.c.bf16 %v43_v38, %v42_v37  ;;  %v27_v42 = vld [vmem:[%s550_s1 + $0x68] sm:$0xff]  ;;  %v45_v44 = vld [vmem:[%s550_s1 + $0xf8] sm:$0xff]  ;;  %v28_v47 = vld [vmem:[%s550_s1 + $0x70] sm:$0xff] }
   0xc   :  { %v308_v45 = vpack.c.bf16 %v27_v42, %v26_v41  ;;  %v310_v46 = vpack.c.bf16 %v45_v44, %v44_v43  ;;  %v29_v48 = vld [vmem:[%s550_s1 + $0x78] sm:$0xff]  ;;  %v46_v50 = vld [vmem:[%s551_s0] sm:$0xff]  ;;  %v56_v51 = vld [vmem:[%s551_s0 + $0x50] sm:$0xff] }
   0xd   :  { %293 = vmatpush3.bf16.msra.mxu0 %v292_v19  ;;  %324 = vmatpush3.bf16.msra.mxu1 %v292_v19  ;;  %v312_v49 = vpack.c.bf16 %v29_v48, %v28_v47  ;;  %v49_v52 = vld [vmem:[%s551_s0 + $0x18] sm:$0xff]  ;;  %v59_v53 = vld [vmem:[%s551_s0 + $0x68] sm:$0xff]  ;;  %v48_v54 = vld [vmem:[%s551_s0 + $0x10] sm:$0xff] }
   0xe   :  { %295 = vmatprep.subr.bf16.mxu0 %v294_v20  ;;  %317 = vmatprep.subr.bf16.mxu1 %v294_v20  ;;  %v58_v55 = vld [vmem:[%s551_s0 + $0x60] sm:$0xff]  ;;  %v51_v56 = vld [vmem:[%s551_s0 + $0x28] sm:$0xff]  ;;  %v61_v57 = vld [vmem:[%s551_s0 + $0x78] sm:$0xff] }
   0xf   :  { %v50_v58 = vld [vmem:[%s551_s0 + $0x20] sm:$0xff]  ;;  %v60_v59 = vld [vmem:[%s551_s0 + $0x70] sm:$0xff]  ;;  %v53_v60 = vld [vmem:[%s551_s0 + $0x38] sm:$0xff] }
  0x10   :  { %v63_v61 = vld [vmem:[%s551_s0 + $0x88] sm:$0xff]  ;;  %v52_v62 = vld [vmem:[%s551_s0 + $0x30] sm:$0xff]  ;;  %v62_v63 = vld [vmem:[%s551_s0 + $0x80] sm:$0xff] }
  0x11   :  { %297 = vmatpush3.bf16.msra.mxu0 %v296_v27  ;;  %325 = vmatpush3.bf16.msra.mxu1 %v296_v27  ;;  %v55_v0 = vld [vmem:[%s551_s0 + $0x48] sm:$0xff]  ;;  %v54_v1 = vld [vmem:[%s551_s0 + $0x40] sm:$0xff] }
  0x12   :  { %299 = vmatprep.subr.bf16.mxu0 %v298_v28  ;;  %318 = vmatprep.subr.bf16.mxu1 %v298_v28  ;;  %v503_v4 = vld [vmem:[%s552_s2] ss:$0 sm:$0xff] }
  0x15   :  { %301 = vmatpush3.bf16.msra.mxu0 %v300_v33  ;;  %326 = vmatpush3.bf16.msra.mxu1 %v300_v33 }
  0x16   :  { %303 = vmatprep.subr.bf16.mxu0 %v302_v34  ;;  %319 = vmatprep.subr.bf16.mxu1 %v302_v34 }
  0x19   :  { %305 = vmatpush3.bf16.msra.mxu0 %v304_v39  ;;  %327 = vmatpush3.bf16.msra.mxu1 %v304_v39 }
  0x1a   :  { %307 = vmatprep.subr.bf16.mxu0 %v306_v40  ;;  %320 = vmatprep.subr.bf16.mxu1 %v306_v40 }
  0x1d   :  { %309 = vmatpush3.bf16.msra.mxu0 %v308_v45  ;;  %328 = vmatpush3.bf16.msra.mxu1 %v308_v45 }
  0x1e   :  { %311 = vmatprep.subr.bf16.mxu0 %v310_v46  ;;  %321 = vmatprep.subr.bf16.mxu1 %v310_v46 }
  0x21   :  { %313 = vmatpush3.bf16.msra.mxu0 %v312_v49  ;;  %329 = vmatpush3.bf16.msra.mxu1 %v312_v49 }
  0x24   :  { %136 = vmatmul.mubr.f32.vlgmr.msra.gmra.mrb[0].mxu0 %v46_v50  ;;  %161 = vmatmul.mubr.f32.vlgmr.msra.gmra.mrb[0].mxu1 %v56_v51 }
  0x25   :  { %140 = vmatprep.mubr.f32.mxu0 %v49_v52  ;;  %165 = vmatprep.mubr.f32.mxu1 %v59_v53 }
  0x28   :  { %141 = vmatmul.mubr.f32.gmra.mrb[2].mxu0 %v48_v54  ;;  %166 = vmatmul.mubr.f32.gmra.mrb[2].mxu1 %v58_v55 }
  0x29   :  { %145 = vmatprep.mubr.f32.mxu0 %v51_v56  ;;  %170 = vmatprep.mubr.f32.mxu1 %v61_v57 }
  0x2c   :  { %146 = vmatmul.mubr.f32.gmra.mrb[4].mxu0 %v50_v58  ;;  %171 = vmatmul.mubr.f32.gmra.mrb[4].mxu1 %v60_v59 }
  0x2d   :  { %150 = vmatprep.mubr.f32.mxu0 %v53_v60  ;;  %175 = vmatprep.mubr.f32.mxu1 %v63_v61 }
  0x30   :  { %151 = vmatmul.mubr.f32.gmra.mrb[6].mxu0 %v52_v62  ;;  %176 = vmatmul.mubr.f32.gmra.mrb[6].mxu1 %v62_v63 }
  0x31   :  { %155 = vmatprep.mubr.f32.mxu0 %v55_v0 }
  0x34   :  { %156 = vmatmul.mubr.f32.gmra.mrb[8].mxu0 %v54_v1 }
  0xf7   :  { %v255_v2 = vpop.f32.mrb[0].mxu0  ;;  %v270_v3 = vpop.f32.mrb[0].mxu1 }
  0xf8   :  { %v256_v5 = vpop.f32.mrb[1].mxu0  ;;  %v271_v6 = vpop.f32.mrb[1].mxu1 }
  0xf9   :  { %v257_v7 = vadd.f32 %v256_v5, %v255_v2  ;;  %v272_v8 = vadd.f32 %v271_v6, %v270_v3 }
  0xfb   :  { %v138_v9 = vadd.f32 %v257_v7, %v503_v4  ;;  %v163_v10 = vadd.f32 %v272_v8, %v503_v4  ;;  %v258_v11 = vpop.f32.mrb[2].mxu0  ;;  %v273_v12 = vpop.f32.mrb[2].mxu1 }
  0xfc   :  { %v259_v13 = vpop.f32.mrb[3].mxu0  ;;  %v274_v14 = vpop.f32.mrb[3].mxu1 }
  0xfd   :  { %vm181_vm1 = vcmp.ge.f32.partialorder %v138_v9, 0.0  ;;  %v190_v15 = vmul.f32 0.01, %v138_v9  ;;  %vm186_vm2 = vcmp.ge.f32.partialorder %v163_v10, 0.0  ;;  %v195_v16 = vmul.f32 0.01, %v163_v10 }
  0xfe   :  { %v260_v17 = vadd.f32 %v259_v13, %v258_v11  ;;  %v275_v18 = vadd.f32 %v274_v14, %v273_v12 }
  0xff   :  { %v199_v19 = vsel %vm181_vm1, %v138_v9, %v190_v15  ;;  %v204_v20 = vsel %vm186_vm2, %v163_v10, %v195_v16  ;;  %v261_v21 = vpop.f32.mrb[4].mxu0  ;;  %v276_v22 = vpop.f32.mrb[4].mxu1 }
 0x100   :  { %209 = vst.msk [vmem:[%s553_s3] sm:$0xff] %vm208_vm0, %v199_v19  ;;  %214 = vst.msk [vmem:[%s553_s3 + $0x28] sm:$0xff] %vm208_vm0, %v204_v20  ;;  %v143_v23 = vadd.f32 %v260_v17, %v503_v4  ;;  %v168_v24 = vadd.f32 %v275_v18, %v503_v4  ;;  %v262_v25 = vpop.f32.mrb[5].mxu0  ;;  %v277_v26 = vpop.f32.mrb[5].mxu1 }
 0x101   :  { %v263_v27 = vadd.f32 %v262_v25, %v261_v21  ;;  %v278_v28 = vadd.f32 %v277_v26, %v276_v22 }
 0x102   :  { %vm182_vm3 = vcmp.ge.f32.partialorder %v143_v23, 0.0  ;;  %v191_v29 = vmul.f32 0.01, %v143_v23  ;;  %vm187_vm4 = vcmp.ge.f32.partialorder %v168_v24, 0.0  ;;  %v196_v30 = vmul.f32 0.01, %v168_v24 }
 0x103   :  { %v148_v31 = vadd.f32 %v263_v27, %v503_v4  ;;  %v173_v32 = vadd.f32 %v278_v28, %v503_v4  ;;  %v264_v33 = vpop.f32.mrb[6].mxu0  ;;  %v279_v34 = vpop.f32.mrb[6].mxu1 }
 0x104   :  { %v200_v35 = vsel %vm182_vm3, %v143_v23, %v191_v29  ;;  %v205_v36 = vsel %vm187_vm4, %v168_v24, %v196_v30  ;;  %v265_v37 = vpop.f32.mrb[7].mxu0  ;;  %v280_v38 = vpop.f32.mrb[7].mxu1 }
 0x105   :  { %210 = vst.msk [vmem:[%s553_s3 + $0x8] sm:$0xff] %vm208_vm0, %v200_v35  ;;  %215 = vst.msk [vmem:[%s553_s3 + $0x30] sm:$0xff] %vm208_vm0, %v205_v36  ;;  %vm183_vm5 = vcmp.ge.f32.partialorder %v148_v31, 0.0  ;;  %v192_v39 = vmul.f32 0.01, %v148_v31  ;;  %vm188_vm6 = vcmp.ge.f32.partialorder %v173_v32, 0.0  ;;  %v266_v41 = vadd.f32 %v265_v37, %v264_v33 }
 0x106   :  { %v197_v40 = vmul.f32 0.01, %v173_v32  ;;  %v281_v42 = vadd.f32 %v280_v38, %v279_v34 }
 0x107   :  { %v201_v43 = vsel %vm183_vm5, %v148_v31, %v192_v39  ;;  %v267_v45 = vpop.f32.mrb[8].mxu0  ;;  %v153_v46 = vadd.f32 %v266_v41, %v503_v4 }
 0x108   :  { %v206_v44 = vsel %vm188_vm6, %v173_v32, %v197_v40  ;;  %211 = vst.msk [vmem:[%s553_s3 + $0x10] sm:$0xff] %vm208_vm0, %v201_v43  ;;  %v178_v47 = vadd.f32 %v281_v42, %v503_v4  ;;  %v268_v48 = vpop.f32.mrb[9].mxu0 }
 0x109   :  { %216 = vst.msk [vmem:[%s553_s3 + $0x38] sm:$0xff] %vm208_vm0, %v206_v44  ;;  %v269_v49 = vadd.f32 %v268_v48, %v267_v45  ;;  %vm184_vm7 = vcmp.ge.f32.partialorder %v153_v46, 0.0  ;;  %v193_v50 = vmul.f32 0.01, %v153_v46 }
 0x10a   :  { %vm189_vm8 = vcmp.ge.f32.partialorder %v178_v47, 0.0  ;;  %v198_v51 = vmul.f32 0.01, %v178_v47 }
 0x10b   :  { %v158_v52 = vadd.f32 %v269_v49, %v503_v4  ;;  %v202_v53 = vsel %vm184_vm7, %v153_v46, %v193_v50 }
 0x10c   :  { %v207_v54 = vsel %vm189_vm8, %v178_v47, %v198_v51  ;;  %212 = vst.msk [vmem:[%s553_s3 + $0x18] sm:$0xff] %vm208_vm0, %v202_v53 }
 0x10d   :  { %217 = vst.msk [vmem:[%s553_s3 + $0x40] sm:$0xff] %vm208_vm0, %v207_v54  ;;  %vm185_vm9 = vcmp.ge.f32.partialorder %v158_v52, 0.0  ;;  %v194_v55 = vmul.f32 0.01, %v158_v52 }
 0x10f   :  { %v203_v56 = vsel %vm185_vm9, %v158_v52, %v194_v55 }
 0x110   :  { %213 = vst.msk [vmem:[%s553_s3 + $0x20] sm:$0xff] %vm208_vm0, %v203_v56 }

// kernel: _lambda_.3
= control target key start
LH: loop header
LB: loop body
LE: loop exit
PB: predicated region body
PF: predicated region fallthrough
CT: control target
= control target key end

     0   :  { %v1444_v47 = vmov 1983009808   ;;  %v110_v49 = vlaneseq  ;;  %s2157_s0 = inlined_call_operand.vmem [shape: f32[2,512], index: 0, kind: input, shape index: {}]   ;;  %s2158_s1 = inlined_call_operand.vmem [shape: f32[512,64], index: 1, kind: input, shape index: {}]   ;;  %s2159_s2 = inlined_call_operand.vmem [shape: f32[1,64], index: 2, kind: input, shape index: {}]   ;;  %s2160_s3 = inlined_call_operand.vmem [shape: f32[64,32], index: 3, kind: input, shape index: {}]   ;;  %s2161_s4 = inlined_call_operand.vmem [shape: f32[1,32], index: 4, kind: input, shape index: {}]   ;;  %s2162_s5 = inlined_call_operand.vmem [shape: f32[32,160], index: 5, kind: input, shape index: {}]   ;;  %s2163_s6 = inlined_call_operand.vmem [shape: f32[1,160], index: 6, kind: input, shape index: {}]   ;;  %s2164_s7 = inlined_call_operand.vmem [shape: f32[5,160,3], index: 7, kind: input, shape index: {}]   ;;  %s2165_s8 = inlined_call_operand.vmem [shape: f32[5,1,3], index: 8, kind: input, shape index: {}]   ;;  %s2166_s9 = inlined_call_operand.hbm [shape: f32[2,3], index: 9, kind: output, shape index: {}]  }
   0x1   :  { %v50_v0 = vld [vmem:[%s2158_s1 + $0x80] sm:$0xff]  ;;  %v51_v1 = vld [vmem:[%s2158_s1 + $0x88] sm:$0xff]  ;;  %v52_v11 = vld [vmem:[%s2158_s1 + $0x90] sm:$0xff]  ;;  %v108_v48 = vunpack.c.l.s4 %v1444_v47 }
   0x2   :  { %v34_v2 = vld [vmem:[%s2158_s1] sm:$0xff]  ;;  %v1180_v3 = vpack.c.bf16 %v51_v1, %v50_v0  ;;  %v35_v4 = vld [vmem:[%s2158_s1 + $0x8] sm:$0xff]  ;;  %v53_v13 = vld [vmem:[%s2158_s1 + $0x98] sm:$0xff]  ;;  %v1625_v0 = vshrl.u32 %v110_v49, 7 }
   0x3   :  { %v82_v5 = vld [vmem:[%s2158_s1 + $0x180] sm:$0xff]  ;;  %v83_v6 = vld [vmem:[%s2158_s1 + $0x188] sm:$0xff]  ;;  %v1182_v7 = vpack.c.bf16 %v35_v4, %v34_v2  ;;  %v36_v14 = vld [vmem:[%s2158_s1 + $0x10] sm:$0xff]  ;;  %v1184_v16 = vpack.c.bf16 %v53_v13, %v52_v11  ;;  %v109_v63 = vunpack.c.0.s8 %v108_v48 }
   0x4   :  { %v1212_v8 = vpack.c.bf16 %v83_v6, %v82_v5  ;;  %v66_v9 = vld [vmem:[%s2158_s1 + $0x100] sm:$0xff]  ;;  %v67_v10 = vld [vmem:[%s2158_s1 + $0x108] sm:$0xff]  ;;  %1181 = vmatprep.subr.bf16.mxu0 %v1180_v3  ;;  %v37_v15 = vld [vmem:[%s2158_s1 + $0x18] sm:$0xff] }
   0x5   :  { %v1214_v12 = vpack.c.bf16 %v67_v10, %v66_v9  ;;  %1183 = vmatpush3.bf16.msra.mxu0 %v1182_v7  ;;  %v1186_v17 = vpack.c.bf16 %v37_v15, %v36_v14  ;;  %v84_v18 = vld [vmem:[%s2158_s1 + $0x190] sm:$0xff]  ;;  %v85_v19 = vld [vmem:[%s2158_s1 + $0x198] sm:$0xff]  ;;  %v54_v23 = vld [vmem:[%s2158_s1 + $0xa0] sm:$0xff]  ;;  %v112_v13 = vsub.s32 %v109_v63, %v1625_v0 }
   0x6   :  { %1213 = vmatprep.subr.bf16.mxu1 %v1212_v8  ;;  %v68_v20 = vld [vmem:[%s2158_s1 + $0x110] sm:$0xff]  ;;  %v1216_v21 = vpack.c.bf16 %v85_v19, %v84_v18  ;;  %v69_v22 = vld [vmem:[%s2158_s1 + $0x118] sm:$0xff]  ;;  %v55_v24 = vld [vmem:[%s2158_s1 + $0xa8] sm:$0xff]  ;;  %1185 = vmatprep.subr.bf16.mxu0 %v1184_v16 }
   0x7   :  { %1215 = vmatpush3.bf16.msra.mxu1 %v1214_v12  ;;  %v1218_v25 = vpack.c.bf16 %v69_v22, %v68_v20  ;;  %v1188_v26 = vpack.c.bf16 %v55_v24, %v54_v23  ;;  %v38_v27 = vld [vmem:[%s2158_s1 + $0x20] sm:$0xff]  ;;  %v39_v28 = vld [vmem:[%s2158_s1 + $0x28] sm:$0xff]  ;;  %v56_v35 = vld [vmem:[%s2158_s1 + $0xb0] sm:$0xff] }
   0x8   :  { %v86_v29 = vld [vmem:[%s2158_s1 + $0x1a0] sm:$0xff]  ;;  %1217 = vmatprep.subr.bf16.mxu1 %v1216_v21  ;;  %v87_v30 = vld [vmem:[%s2158_s1 + $0x1a8] sm:$0xff]  ;;  %v1190_v33 = vpack.c.bf16 %v39_v28, %v38_v27  ;;  %v57_v36 = vld [vmem:[%s2158_s1 + $0xb8] sm:$0xff] }
   0x9   :  { %v70_v31 = vld [vmem:[%s2158_s1 + $0x120] sm:$0xff]  ;;  %v71_v32 = vld [vmem:[%s2158_s1 + $0x128] sm:$0xff]  ;;  %1187 = vmatpush3.bf16.msra.mxu0 %v1186_v17  ;;  %v1220_v34 = vpack.c.bf16 %v87_v30, %v86_v29  ;;  %v40_v37 = vld [vmem:[%s2158_s1 + $0x30] sm:$0xff]  ;;  %v1192_v39 = vpack.c.bf16 %v57_v36, %v56_v35 }
   0xa   :  { %1189 = vmatprep.subr.bf16.mxu0 %v1188_v26  ;;  %v1222_v38 = vpack.c.bf16 %v71_v32, %v70_v31  ;;  %v41_v40 = vld [vmem:[%s2158_s1 + $0x38] sm:$0xff]  ;;  %v88_v41 = vld [vmem:[%s2158_s1 + $0x1b0] sm:$0xff]  ;;  %v58_v46 = vld [vmem:[%s2158_s1 + $0xc0] sm:$0xff] }
   0xb   :  { %1219 = vmatpush3.bf16.msra.mxu1 %v1218_v25  ;;  %v89_v42 = vld [vmem:[%s2158_s1 + $0x1b8] sm:$0xff]  ;;  %v72_v44 = vld [vmem:[%s2158_s1 + $0x130] sm:$0xff]  ;;  %v59_v50 = vld [vmem:[%s2158_s1 + $0xc8] sm:$0xff]  ;;  %v1194_v51 = vpack.c.bf16 %v41_v40, %v40_v37 }
   0xc   :  { %1221 = vmatprep.subr.bf16.mxu1 %v1220_v34  ;;  %v1224_v43 = vpack.c.bf16 %v89_v42, %v88_v41  ;;  %v73_v45 = vld [vmem:[%s2158_s1 + $0x138] sm:$0xff]  ;;  %v90_v52 = vld [vmem:[%s2158_s1 + $0x1c0] sm:$0xff]  ;;  %v91_v53 = vld [vmem:[%s2158_s1 + $0x1c8] sm:$0xff]  ;;  %v1196_v55 = vpack.c.bf16 %v59_v50, %v58_v46 }
   0xd   :  { %1191 = vmatpush3.bf16.msra.mxu0 %v1190_v33  ;;  %v1226_v54 = vpack.c.bf16 %v73_v45, %v72_v44  ;;  %v42_v56 = vld [vmem:[%s2158_s1 + $0x40] sm:$0xff]  ;;  %v43_v57 = vld [vmem:[%s2158_s1 + $0x48] sm:$0xff]  ;;  %v1228_v59 = vpack.c.bf16 %v91_v53, %v90_v52  ;;  %v60_v61 = vld [vmem:[%s2158_s1 + $0xd0] sm:$0xff] }
   0xe   :  { %1193 = vmatprep.subr.bf16.mxu0 %v1192_v39  ;;  %v74_v58 = vld [vmem:[%s2158_s1 + $0x140] sm:$0xff]  ;;  %v75_v60 = vld [vmem:[%s2158_s1 + $0x148] sm:$0xff]  ;;  %v61_v62 = vld [vmem:[%s2158_s1 + $0xd8] sm:$0xff]  ;;  %v1198_v3 = vpack.c.bf16 %v43_v57, %v42_v56 }
   0xf   :  { %1223 = vmatpush3.bf16.msra.mxu1 %v1222_v38  ;;  %v92_v1 = vld [vmem:[%s2158_s1 + $0x1d0] sm:$0xff]  ;;  %v93_v2 = vld [vmem:[%s2158_s1 + $0x1d8] sm:$0xff]  ;;  %v1230_v4 = vpack.c.bf16 %v75_v60, %v74_v58  ;;  %v1200_v5 = vpack.c.bf16 %v61_v62, %v60_v61  ;;  %v62_v11 = vld [vmem:[%s2158_s1 + $0xe0] sm:$0xff] }
  0x10   :  { %1225 = vmatprep.subr.bf16.mxu1 %v1224_v43  ;;  %v44_v6 = vld [vmem:[%s2158_s1 + $0x50] sm:$0xff]  ;;  %v45_v7 = vld [vmem:[%s2158_s1 + $0x58] sm:$0xff]  ;;  %v1232_v9 = vpack.c.bf16 %v93_v2, %v92_v1  ;;  %v63_v12 = vld [vmem:[%s2158_s1 + $0xe8] sm:$0xff] }
  0x11   :  { %1195 = vmatpush3.bf16.msra.mxu0 %v1194_v51  ;;  %v76_v8 = vld [vmem:[%s2158_s1 + $0x150] sm:$0xff]  ;;  %v77_v10 = vld [vmem:[%s2158_s1 + $0x158] sm:$0xff]  ;;  %v94_v14 = vld [vmem:[%s2158_s1 + $0x1e0] sm:$0xff]  ;;  %v1202_v16 = vpack.c.bf16 %v45_v7, %v44_v6  ;;  %v1204_v20 = vpack.c.bf16 %v63_v12, %v62_v11 }
  0x12   :  { %1197 = vmatprep.subr.bf16.mxu0 %v1196_v55  ;;  %v95_v15 = vld [vmem:[%s2158_s1 + $0x1e8] sm:$0xff]  ;;  %v46_v17 = vld [vmem:[%s2158_s1 + $0x60] sm:$0xff]  ;;  %v1234_v19 = vpack.c.bf16 %v77_v10, %v76_v8  ;;  %v64_v25 = vld [vmem:[%s2158_s1 + $0xf0] sm:$0xff] }
  0x13   :  { %1227 = vmatpush3.bf16.msra.mxu1 %v1226_v54  ;;  %v47_v18 = vld [vmem:[%s2158_s1 + $0x68] sm:$0xff]  ;;  %v78_v21 = vld [vmem:[%s2158_s1 + $0x160] sm:$0xff]  ;;  %v1236_v24 = vpack.c.bf16 %v95_v15, %v94_v14  ;;  %v65_v26 = vld [vmem:[%s2158_s1 + $0xf8] sm:$0xff] }
  0x14   :  { %1229 = vmatprep.subr.bf16.mxu1 %v1228_v59  ;;  %v79_v22 = vld [vmem:[%s2158_s1 + $0x168] sm:$0xff]  ;;  %v33_v23 = vld [vmem:[%s2157_s0] sm:$0xff] }
  0x15   :  { %1199 = vmatpush3.bf16.msra.mxu0 %v1198_v3  ;;  %v113_v27 = vrot.slane %v33_v23, %v112_v13  ;;  %v106_v28 = vcombine.high %v33_v23, %v33_v23 }
  0x16   :  { %1201 = vmatprep.subr.bf16.mxu0 %v1200_v5 }
  0x17   :  { %1231 = vmatpush3.bf16.msra.mxu1 %v1230_v4 }
  0x18   :  { %1233 = vmatprep.subr.bf16.mxu1 %v1232_v9 }
  0x19   :  { %14 = vsyncpa [#allocation3], 0  ;;  %v96_v29 = vld [vmem:[%s2158_s1 + $0x1f0] sm:$0xff]  ;;  %v97_v30 = vld [vmem:[%s2158_s1 + $0x1f8] sm:$0xff]  ;;  %1203 = vmatpush3.bf16.msra.mxu0 %v1202_v16  ;;  %v1206_v31 = vpack.c.bf16 %v47_v18, %v46_v17  ;;  %v121_v32 = vcombine.high %v113_v27, %v113_v27  ;;  %v120_v33 = vrot.slane %v106_v28, %v112_v13  ;;  %v1238_v34 = vpack.c.bf16 %v79_v22, %v78_v21  ;;  %s1448_s14 = smov [#allocation2]  }
  0x1a   :  { %1205 = vmatprep.subr.bf16.mxu0 %v1204_v20  ;;  %v1208_v35 = vpack.c.bf16 %v65_v26, %v64_v25  ;;  %v48_v36 = vld [vmem:[%s2158_s1 + $0x70] sm:$0xff]  ;;  %v49_v37 = vld [vmem:[%s2158_s1 + $0x78] sm:$0xff]  ;;  %v1240_v38 = vpack.c.bf16 %v97_v30, %v96_v29  ;;  %v270_v44 = vld [vmem:[%s2160_s3] sm:$0xff]  ;;  %v1445_v47 = vmov 0.0|0.0   ;;  %vm1446_vm0 = vmmov 0   ;;  %s976_s15 = sshll.u32 %s1448_s14, 4  ;;  %s977_s15 = int_to_ptr.vmem [resolvable:$true] %s976_s15 }
  0x1b   :  { %1235 = vmatpush3.bf16.msra.mxu1 %v1234_v19  ;;  %v80_v39 = vld [vmem:[%s2158_s1 + $0x170] sm:$0xff]  ;;  %v81_v40 = vld [vmem:[%s2158_s1 + $0x178] sm:$0xff]  ;;  %191 = vmatprep.mubr.f32.mxu0 %v121_v32  ;;  %v122_v41 = vcombine.high %v120_v33, %v120_v33  ;;  %v1210_v42 = vpack.c.bf16 %v49_v37, %v48_v36  ;;  %v271_v45 = vld [vmem:[%s2160_s3 + $0x8] sm:$0xff]  ;;  %v1447_v57 = vmov 0.0   ;;  %vm285_vm2 = vcmask 523264   ;;  %s1420_s1 = scalar_lea.vmem %s977_s15, 32  ;;  %p1425_p1 = scmp.lt.s32.totalorder %s977_s15, %s977_s15 }
  0x1c   :  { %1237 = vmatprep.subr.bf16.mxu1 %v1236_v24  ;;  %v1242_v43 = vpack.c.bf16 %v81_v40, %v80_v39  ;;  %v1245_v46 = vpack.c.bf16 %v271_v45, %v270_v44  ;;  %v272_v48 = vld [vmem:[%s2160_s3 + $0x10] sm:$0xff]  ;;  %v273_v49 = vld [vmem:[%s2160_s3 + $0x18] sm:$0xff]  ;;  %v274_v51 = vld [vmem:[%s2160_s3 + $0x20] sm:$0xff]  ;;  %vm382_vm4 = vcmask 261120   ;;  %vm968_vm5 = vcmask 17408   ;;  %p1421_p0 = scmp.ne.s32.totalorder %s977_s15, %s1420_s1  ;;  %p1426_p2 = scmp.lt.s32.totalorder %s1420_s1, %s1420_s1 }
  0x1d   :  { %1207 = vmatpush3.bf16.msra.mxu0 %v1206_v31  ;;  %261 = vmatprep.mubr.f32.mxu1 %v122_v41  ;;  %v1248_v50 = vpack.c.bf16 %v273_v49, %v272_v48  ;;  %v275_v52 = vld [vmem:[%s2160_s3 + $0x28] sm:$0xff]  ;;  %v276_v54 = vld [vmem:[%s2160_s3 + $0x30] sm:$0xff]  ;;  %v277_v55 = vld [vmem:[%s2160_s3 + $0x38] sm:$0xff] }
  0x1e   :  { %1209 = vmatprep.subr.bf16.mxu0 %v1208_v35  ;;  %v1251_v53 = vpack.c.bf16 %v275_v52, %v274_v51  ;;  %v1254_v56 = vpack.c.bf16 %v277_v55, %v276_v54  ;;  %v363_v58 = vld [vmem:[%s2162_s5 + $0x8] sm:$0xff]  ;;  %v365_v59 = vld [vmem:[%s2162_s5 + $0x18] sm:$0xff]  ;;  %v984_v62 = vld [vmem:[%s2159_s2] ss:$0 sm:$0xff]  ;;  %p1427_p3 = por %p1426_p2, %p1425_p1 }
  0x1f   :  { %1239 = vmatpush3.bf16.msra.mxu1 %v1238_v34  ;;  %v1256_v60 = vpack.c.bf16 %v365_v59, %v363_v58  ;;  %v362_v6 = vld [vmem:[%s2162_s5] sm:$0xff]  ;;  %v364_v7 = vld [vmem:[%s2162_s5 + $0x10] sm:$0xff]  ;;  %v367_v12 = vld [vmem:[%s2162_s5 + $0x28] sm:$0xff] }
  0x20   :  { %1241 = vmatprep.subr.bf16.mxu1 %v1240_v38  ;;  %v1258_v10 = vpack.c.bf16 %v364_v7, %v362_v6  ;;  %v369_v13 = vld [vmem:[%s2162_s5 + $0x38] sm:$0xff]  ;;  %v366_v15 = vld [vmem:[%s2162_s5 + $0x20] sm:$0xff]  ;;  %v368_v16 = vld [vmem:[%s2162_s5 + $0x30] sm:$0xff]  ;;  %p1428_p4 = pnand %p1427_p3, %p1421_p0 }
  0x21   :  { %1211 = vmatpush3.bf16.msra.mxu0 %v1210_v42  ;;  %v1260_v14 = vpack.c.bf16 %v369_v13, %v367_v12  ;;  %v1262_v17 = vpack.c.bf16 %v368_v16, %v366_v15  ;;  %v459_v18 = vld [vmem:[%s2164_s7] sm:$0xff]  ;;  %v460_v19 = vld [vmem:[%s2164_s7 + $0x8] sm:$0xff]  ;;  %v461_v21 = vld [vmem:[%s2164_s7 + $0x10] sm:$0xff] }
  0x22   :  { %1244 = vmatprep.subr.bf16.mxu0 %v1445_v47  ;;  %v1265_v20 = vpack.c.bf16 %v460_v19, %v459_v18  ;;  %v462_v22 = vld [vmem:[%s2164_s7 + $0x18] sm:$0xff]  ;;  %v463_v24 = vld [vmem:[%s2164_s7 + $0x20] sm:$0xff]  ;;  %v464_v25 = vld [vmem:[%s2164_s7 + $0x28] sm:$0xff] }
  0x23   :  { %1243 = vmatpush3.bf16.msra.mxu1 %v1242_v43  ;;  %v1268_v23 = vpack.c.bf16 %v462_v22, %v461_v21  ;;  %v1271_v26 = vpack.c.bf16 %v464_v25, %v463_v24  ;;  %v466_v28 = vld [vmem:[%s2164_s7 + $0x38] sm:$0xff]  ;;  %v467_v30 = vld [vmem:[%s2164_s7 + $0x40] sm:$0xff]  ;;  %v468_v31 = vld [vmem:[%s2164_s7 + $0x48] sm:$0xff]  ;;  %v374_v22 = vsub.s32 0, %v1625_v0  ;;  %v378_v24 = vsub.s32 1, %v1625_v0 }
  0x24   :  { %1264 = vmatprep.subr.bf16.mxu1 %v1445_v47  ;;  %192 = vmatmul.mubr.f32.vlgmr.msra.gmra.mrb[0].mxu0 %v113_v27  ;;  %v465_v27 = vld [vmem:[%s2164_s7 + $0x30] sm:$0xff]  ;;  %v1277_v32 = vpack.c.bf16 %v468_v31, %v467_v30  ;;  %v470_v34 = vld [vmem:[%s2164_s7 + $0x58] sm:$0xff]  ;;  %v471_v36 = vld [vmem:[%s2164_s7 + $0x60] sm:$0xff] }
  0x25   :  { %1246 = vmatpush3.bf16.msra.mxu0 %v1245_v46  ;;  %1177 = vmatprep.mubr.msk.f32.mxu0 %vm1446_vm0, %v1447_v57  ;;  %v1274_v29 = vpack.c.bf16 %v466_v28, %v465_v27  ;;  %v472_v37 = vld [vmem:[%s2164_s7 + $0x68] sm:$0xff]  ;;  %v473_v39 = vld [vmem:[%s2164_s7 + $0x70] sm:$0xff]  ;;  %v474_v40 = vld [vmem:[%s2164_s7 + $0x78] sm:$0xff] }
  0x26   :  { %262 = vmatmul.mubr.f32.vlgmr.msra.gmra.mrb[0].mxu1 %v120_v33  ;;  %1247 = vmatprep.subr.bf16.mxu0 %v1445_v47  ;;  %v469_v33 = vld [vmem:[%s2164_s7 + $0x50] sm:$0xff]  ;;  %v1283_v38 = vpack.c.bf16 %v472_v37, %v471_v36  ;;  %v1286_v41 = vpack.c.bf16 %v474_v40, %v473_v39  ;;  %v475_v42 = vld [vmem:[%s2164_s7 + $0x80] sm:$0xff]  ;;  %v476_v43 = vld [vmem:[%s2164_s7 + $0x88] sm:$0xff] }
  0x27   :  { %1266 = vmatpush1.bf16.msra.mxu1 %v1265_v20  ;;  %v1280_v35 = vpack.c.bf16 %v470_v34, %v469_v33  ;;  %v1289_v44 = vpack.c.bf16 %v476_v43, %v475_v42  ;;  %v985_v45 = vld [vmem:[%s2161_s4] ss:$0 sm:$0xff]  ;;  %v991_v49 = vld [vmem:[%s2164_s7 + $0xa8] sm:$0xff]  ;;  %v992_v54 = vld [vmem:[%s2164_s7 + $0xb0] sm:$0xff] }
  0x28   :  { %1267 = vmatprep.subr.bf16.mxu1 %v1445_v47  ;;  %v990_v48 = vld [vmem:[%s2164_s7 + $0xa0] sm:$0xff]  ;;  %v993_v55 = vld [vmem:[%s2164_s7 + $0xb8] sm:$0xff]  ;;  %v995_v59 = vld [vmem:[%s2164_s7 + $0xc8] sm:$0xff] }
  0x29   :  { %1249 = vmatpush3.bf16.msra.mxu0 %v1248_v50  ;;  %v994_v58 = vld [vmem:[%s2164_s7 + $0xc0] sm:$0xff]  ;;  %v477_v16 = vld [vmem:[%s2164_s7 + $0x90] sm:$0xff]  ;;  %v1009_v20 = vld [vmem:[%s2164_s7 + $0x138] sm:$0xff] }
  0x2a   :  { %1250 = vmatprep.subr.bf16.mxu0 %v1445_v47  ;;  %v1002_v7 = vld [vmem:[%s2164_s7 + $0x100] sm:$0xff]  ;;  %v1008_v18 = vld [vmem:[%s2164_s7 + $0x130] sm:$0xff]  ;;  %v1014_v31 = vld [vmem:[%s2164_s7 + $0x148] sm:$0xff] }
  0x2b   :  { %1269 = vmatpush1.bf16.msra.mxu1 %v1268_v23  ;;  %v1006_v13 = vld [vmem:[%s2164_s7 + $0x120] sm:$0xff]  ;;  %v1322_v21 = vpack.c.bf16 %v1009_v20, %v1008_v18  ;;  %v1037_v0 = vld [vmem:[%s2164_s7 + $0x1e8] sm:$0xff]  ;;  %v1015_v37 = vld [vmem:[%s2164_s7 + $0x150] sm:$0xff] }
  0x2c   :  { %1270 = vmatprep.subr.bf16.mxu1 %v1445_v47  ;;  %v370_v23 = vld [vmem:[%s2163_s6] sm:$0x3]  ;;  %v1016_v39 = vld [vmem:[%s2164_s7 + $0x158] sm:$0xff]  ;;  %v1038_v40 = vld [vmem:[%s2164_s7 + $0x1f0] sm:$0xff] }
  0x2d   :  { %1252 = vmatpush3.bf16.msra.mxu0 %v1251_v53  ;;  %v1295_v53 = vpack.c.bf16 %v991_v49, %v990_v48  ;;  %v375_v25 = vrot.slane %v370_v23, %v374_v22  ;;  %v1013_v28 = vld [vmem:[%s2164_s7 + $0x140] sm:$0xff]  ;;  %v1328_v42 = vpack.c.bf16 %v1016_v39, %v1015_v37  ;;  %v1041_v48 = vld [vmem:[%s2164_s7 + $0x208] sm:$0xff] }
  0x2e   :  { %1253 = vmatprep.subr.bf16.mxu0 %v1445_v47  ;;  %v1029_v18 = vld [vmem:[%s2164_s7 + $0x1c0] sm:$0xff]  ;;  %v1064_v37 = vld [vmem:[%s2164_s7 + $0x2a8] sm:$0xff] }
  0x2f   :  { %1272 = vmatpush1.bf16.msra.mxu1 %v1271_v26  ;;  %v379_v26 = vrot.slane %v370_v23, %v378_v24  ;;  %v1052_v20 = vld [vmem:[%s2164_s7 + $0x260] sm:$0xff]  ;;  %v1031_v24 = vld [vmem:[%s2164_s7 + $0x1d0] sm:$0xff] }
  0x30   :  { %1273 = vmatprep.subr.bf16.mxu1 %v1445_v47 }
  0x31   :  { %1255 = vmatpush3.bf16.msra.mxu0 %v1254_v56 }
  0x32   :  { %1257 = vmatprep.subr.bf16.mxu0 %v1256_v60  ;;  %v1301_v60 = vpack.c.bf16 %v995_v59, %v994_v58  ;;  %v1022_v58 = vld [vmem:[%s2164_s7 + $0x188] sm:$0xff]  ;;  %v1044_v59 = vld [vmem:[%s2164_s7 + $0x220] sm:$0xff] }
  0x33   :  { %1275 = vmatpush1.bf16.msra.mxu1 %v1274_v29 }
  0x34   :  { %1276 = vmatprep.subr.bf16.mxu1 %v1445_v47 }
  0x37   :  { %1278 = vmatpush1.bf16.msra.mxu1 %v1277_v32  ;;  %v1036_v32 = vld [vmem:[%s2164_s7 + $0x1e0] sm:$0xff] }
  0x38   :  { %1279 = vmatprep.subr.bf16.mxu1 %v1445_v47  ;;  %v1355_v36 = vpack.c.bf16 %v1037_v0, %v1036_v32  ;;  %v1061_v0 = vld [vmem:[%s2164_s7 + $0x290] sm:$0xff] }
  0x3b   :  { %1281 = vmatpush1.bf16.msra.mxu1 %v1280_v35  ;;  %v1325_v35 = vpack.c.bf16 %v1014_v31, %v1013_v28  ;;  %v1060_v31 = vld [vmem:[%s2164_s7 + $0x288] sm:$0xff] }
  0x3c   :  { %1282 = vmatprep.subr.bf16.mxu1 %v1445_v47 }
  0x3f   :  { %1284 = vmatpush1.bf16.msra.mxu1 %v1283_v38 }
  0x40   :  { %1285 = vmatprep.subr.bf16.mxu1 %v1445_v47 }
  0x43   :  { %1287 = vmatpush1.bf16.msra.mxu1 %v1286_v41  ;;  %v1039_v41 = vld [vmem:[%s2164_s7 + $0x1f8] sm:$0xff] }
  0x44   :  { %1288 = vmatprep.subr.bf16.mxu1 %v1445_v47  ;;  %v1358_v43 = vpack.c.bf16 %v1039_v41, %v1038_v40  ;;  %v1065_v40 = vld [vmem:[%s2164_s7 + $0x2b0] sm:$0xff] }
  0x47   :  { %1290 = vmatpush1.bf16.msra.mxu1 %v1289_v44  ;;  %v1017_v44 = vld [vmem:[%s2164_s7 + $0x160] sm:$0xff] }
  0x48   :  { %1291 = vmatprep.subr.bf16.mxu1 %v1445_v47 }
  0xf7   :  { %v1114_v61 = vpop.f32.mrb[0].mxu0 }
  0xf8   :  { %v1115_v63 = vpop.f32.mrb[1].mxu0 }
  0xf9   :  { %v1149_v1 = vpop.f32.mrb[0].mxu1  ;;  %v1116_v2 = vadd.f32 %v1115_v63, %v1114_v61  ;;  %v996_v61 = vld [vmem:[%s2164_s7 + $0xd0] sm:$0xff] }
  0xfa   :  { %v1150_v3 = vpop.f32.mrb[1].mxu1 }
  0xfb   :  { %v1151_v4 = vadd.f32 %v1150_v3, %v1149_v1  ;;  %v194_v5 = vadd.f32 %v1116_v2, %v984_v62  ;;  %v997_v62 = vld [vmem:[%s2164_s7 + $0xd8] sm:$0xff]  ;;  %v998_v1 = vld [vmem:[%s2164_s7 + $0xe0] sm:$0xff]  ;;  %v999_v2 = vld [vmem:[%s2164_s7 + $0xe8] sm:$0xff] }
  0xfc   :  { %v1304_v63 = vpack.c.bf16 %v997_v62, %v996_v61  ;;  %v1307_v3 = vpack.c.bf16 %v999_v2, %v998_v1  ;;  %v1024_v1 = vld [vmem:[%s2164_s7 + $0x198] sm:$0xff]  ;;  %v1046_v2 = vld [vmem:[%s2164_s7 + $0x230] sm:$0xff] }
  0xfd   :  { %v264_v8 = vadd.f32 %v1151_v4, %v194_v5  ;;  %v1000_v4 = vld [vmem:[%s2164_s7 + $0xf0] sm:$0xff]  ;;  %v1001_v5 = vld [vmem:[%s2164_s7 + $0xf8] sm:$0xff] }
  0xfe   :  { %v1310_v6 = vpack.c.bf16 %v1001_v5, %v1000_v4 }
  0xff   :  { %vm267_vm1 = vcmp.ge.f32.partialorder %v264_v8, 0.0  ;;  %v268_v9 = vmul.f32 0.01, %v264_v8 }
 0x101   :  { %v269_v11 = vsel %vm267_vm1, %v264_v8, %v268_v9  ;;  %v1003_v8 = vld [vmem:[%s2164_s7 + $0x108] sm:$0xff] }
 0x102   :  { %1178 = vmatmul.mubr.msk.f32.vlgmr.msra.gmra.mrb[2].mxu0 %vm285_vm2, %v269_v11  ;;  %v1313_v9 = vpack.c.bf16 %v1003_v8, %v1002_v7  ;;  %v1005_v11 = vld [vmem:[%s2164_s7 + $0x118] sm:$0xff]  ;;  %v1026_v7 = vld [vmem:[%s2164_s7 + $0x1a8] sm:$0xff]  ;;  %v1048_v8 = vld [vmem:[%s2164_s7 + $0x240] sm:$0xff] }
 0x103   :  { %1259 = vmatpush1.bf16.msra.mxu0 %v1258_v10  ;;  %450 = vmatprep.mubr.f32.mxu0 %v1447_v57  ;;  %v1298_v57 = vpack.c.bf16 %v993_v55, %v992_v54  ;;  %v1004_v10 = vld [vmem:[%s2164_s7 + $0x110] sm:$0xff]  ;;  %v1043_v54 = vld [vmem:[%s2164_s7 + $0x218] sm:$0xff] }
 0x104   :  { %1261 = vmatprep.subr.bf16.mxu0 %v1260_v14  ;;  %v1316_v12 = vpack.c.bf16 %v1005_v11, %v1004_v10  ;;  %v1007_v14 = vld [vmem:[%s2164_s7 + $0x128] sm:$0xff] }
 0x105   :  { %v1319_v15 = vpack.c.bf16 %v1007_v14, %v1006_v13  ;;  %v1028_v13 = vld [vmem:[%s2164_s7 + $0x1b8] sm:$0xff]  ;;  %v1050_v14 = vld [vmem:[%s2164_s7 + $0x250] sm:$0xff] }
 0x107   :  { %1263 = vmatpush1.bf16.msra.mxu0 %v1262_v17  ;;  %v478_v17 = vld [vmem:[%s2164_s7 + $0x98] sm:$0xff] }
 0x108   :  { %1294 = vmatprep.subr.bf16.mxu0 %v1445_v47  ;;  %v1292_v19 = vpack.c.bf16 %v478_v17, %v477_v16 }
 0x10a   :  { %1293 = vmatpush1.bf16.msra.mxu1 %v1292_v19  ;;  %v1030_v19 = vld [vmem:[%s2164_s7 + $0x1c8] sm:$0xff] }
 0x10b   :  { %1324 = vmatprep.subr.bf16.mxu1 %v1445_v47  ;;  %v1349_v22 = vpack.c.bf16 %v1030_v19, %v1029_v18 }
 0x1d5   :  { %v355_v46 = vpop.f32.mrb[2].mxu0 }
 0x1d6   :  { %v356_v50 = vadd.f32 %v985_v45, %v355_v46  ;;  %v1179_v51 = vpop.f32.mrb[3].mxu0  ;;  %v1018_v45 = vld [vmem:[%s2164_s7 + $0x168] sm:$0xff]  ;;  %v1040_v46 = vld [vmem:[%s2164_s7 + $0x200] sm:$0xff] }
 0x1d7   :  { %v1331_v49 = vpack.c.bf16 %v1018_v45, %v1017_v44  ;;  %v1019_v51 = vld [vmem:[%s2164_s7 + $0x170] sm:$0xff] }
 0x1d8   :  { %vm359_vm3 = vcmp.ge.f32.partialorder %v356_v50, 0.0  ;;  %v360_v52 = vmul.f32 0.01, %v356_v50  ;;  %v1069_v45 = vld [vmem:[%s2164_s7 + $0x2d0] sm:$0xff] }
 0x1da   :  { %v361_v56 = vsel %vm359_vm3, %v356_v50, %v360_v52  ;;  %v1361_v50 = vpack.c.bf16 %v1041_v48, %v1040_v46  ;;  %v1020_v52 = vld [vmem:[%s2164_s7 + $0x178] sm:$0xff] }
 0x1db   :  { %987 = vmatmul.mubr.msk.f32.vlgmr.msra.gmra.mrb[4].mxu0 %vm382_vm4, %v361_v56  ;;  %v1334_v55 = vpack.c.bf16 %v1020_v52, %v1019_v51  ;;  %v1070_v46 = vld [vmem:[%s2164_s7 + $0x2d8] sm:$0xff]  ;;  %v1073_v52 = vld [vmem:[%s2164_s7 + $0x2f0] sm:$0xff] }
 0x1dc   :  { %1296 = vmatpush1.bf16.msra.mxu0 %v1295_v53  ;;  %v1042_v53 = vld [vmem:[%s2164_s7 + $0x210] sm:$0xff]  ;;  %v1400_v48 = vpack.c.bf16 %v1070_v46, %v1069_v45 }
 0x1dd   :  { %1297 = vmatprep.subr.bf16.mxu0 %v1445_v47  ;;  %v1364_v56 = vpack.c.bf16 %v1043_v54, %v1042_v53  ;;  %v1074_v53 = vld [vmem:[%s2164_s7 + $0x2f8] sm:$0xff] }
 0x1de   :  { %v1406_v54 = vpack.c.bf16 %v1074_v53, %v1073_v52 }
 0x1e0   :  { %1299 = vmatpush1.bf16.msra.mxu0 %v1298_v57  ;;  %v1021_v57 = vld [vmem:[%s2164_s7 + $0x180] sm:$0xff] }
 0x1e1   :  { %1300 = vmatprep.subr.bf16.mxu0 %v1445_v47  ;;  %v1337_v61 = vpack.c.bf16 %v1022_v58, %v1021_v57  ;;  %v1077_v58 = vld [vmem:[%s2164_s7 + $0x310] sm:$0xff] }
 0x1e4   :  { %1302 = vmatpush1.bf16.msra.mxu0 %v1301_v60  ;;  %v1045_v60 = vld [vmem:[%s2164_s7 + $0x228] sm:$0xff] }
 0x1e5   :  { %1303 = vmatprep.subr.bf16.mxu0 %v1445_v47  ;;  %v1367_v62 = vpack.c.bf16 %v1045_v60, %v1044_v59  ;;  %v1078_v59 = vld [vmem:[%s2164_s7 + $0x318] sm:$0xff] }
 0x1e6   :  { %v1412_v60 = vpack.c.bf16 %v1078_v59, %v1077_v58 }
 0x1e8   :  { %1305 = vmatpush1.bf16.msra.mxu0 %v1304_v63  ;;  %v1023_v63 = vld [vmem:[%s2164_s7 + $0x190] sm:$0xff] }
 0x1e9   :  { %1306 = vmatprep.subr.bf16.mxu0 %v1445_v47  ;;  %v1340_v4 = vpack.c.bf16 %v1024_v1, %v1023_v63 }
 0x1ec   :  { %1308 = vmatpush1.bf16.msra.mxu0 %v1307_v3  ;;  %v1047_v3 = vld [vmem:[%s2164_s7 + $0x238] sm:$0xff] }
 0x1ed   :  { %1309 = vmatprep.subr.bf16.mxu0 %v1445_v47  ;;  %v1370_v5 = vpack.c.bf16 %v1047_v3, %v1046_v2 }
 0x1f0   :  { %1311 = vmatpush1.bf16.msra.mxu0 %v1310_v6  ;;  %v1025_v6 = vld [vmem:[%s2164_s7 + $0x1a0] sm:$0xff] }
 0x1f1   :  { %1312 = vmatprep.subr.bf16.mxu0 %v1445_v47  ;;  %v1343_v10 = vpack.c.bf16 %v1026_v7, %v1025_v6 }
 0x1f4   :  { %1314 = vmatpush1.bf16.msra.mxu0 %v1313_v9  ;;  %v1049_v9 = vld [vmem:[%s2164_s7 + $0x248] sm:$0xff] }
 0x1f5   :  { %1315 = vmatprep.subr.bf16.mxu0 %v1445_v47  ;;  %v1373_v11 = vpack.c.bf16 %v1049_v9, %v1048_v8 }
 0x1f8   :  { %1317 = vmatpush1.bf16.msra.mxu0 %v1316_v12  ;;  %v1027_v12 = vld [vmem:[%s2164_s7 + $0x1b0] sm:$0xff] }
 0x1f9   :  { %1318 = vmatprep.subr.bf16.mxu0 %v1445_v47  ;;  %v1346_v16 = vpack.c.bf16 %v1028_v13, %v1027_v12 }
 0x1fc   :  { %1320 = vmatpush1.bf16.msra.mxu0 %v1319_v15  ;;  %v1051_v15 = vld [vmem:[%s2164_s7 + $0x258] sm:$0xff] }
 0x1fd   :  { %1321 = vmatprep.subr.bf16.mxu0 %v1445_v47  ;;  %v1376_v17 = vpack.c.bf16 %v1051_v15, %v1050_v14 }
 0x200   :  { %1323 = vmatpush1.bf16.msra.mxu0 %v1322_v21  ;;  %v1053_v21 = vld [vmem:[%s2164_s7 + $0x268] sm:$0xff] }
 0x201   :  { %1354 = vmatprep.subr.bf16.mxu0 %v1445_v47  ;;  %v1379_v23 = vpack.c.bf16 %v1053_v21, %v1052_v20  ;;  %v1080_v20 = vld [vmem:[%s2165_s8 + $0x4] ss:$0 sm:$0xff] }
 0x2ae   :  { %v452_v27 = vpop.f32.mrb[4].mxu0 }
 0x2af   :  { %v453_v29 = vadd.f32 %v452_v27, %v375_v25  ;;  %v454_v30 = vpop.f32.mrb[5].mxu0  ;;  %v1032_v25 = vld [vmem:[%s2164_s7 + $0x1d8] sm:$0xff] }
 0x2b0   :  { %v455_v33 = vadd.f32 %v454_v30, %v379_v26  ;;  %v1054_v26 = vld [vmem:[%s2164_s7 + $0x270] sm:$0xff]  ;;  %v1055_v27 = vld [vmem:[%s2164_s7 + $0x278] sm:$0xff]  ;;  %v1352_v28 = vpack.c.bf16 %v1032_v25, %v1031_v24  ;;  %v1059_v30 = vld [vmem:[%s2164_s7 + $0x280] sm:$0xff] }
 0x2b1   :  { %v1920_v38 = vmax.f32 %v453_v29, 0.0  ;;  %v1382_v29 = vpack.c.bf16 %v1055_v27, %v1054_v26  ;;  %v1385_v32 = vpack.c.bf16 %v1060_v31, %v1059_v30 }
 0x2b2   :  { %v1915_v34 = vmax.f32 %v455_v33, 0.0  ;;  %v1062_v33 = vld [vmem:[%s2164_s7 + $0x298] sm:$0xff] }
 0x2b4   :  { %989 = vmatprep.mubr.msk.f32.mxu1 %vm382_vm4, %v1915_v34  ;;  %1012 = vmatprep.mubr.msk.f32.mxu0 %vm382_vm4, %v1915_v34 }
 0x2b5   :  { %554 = vmatmul.mubr.f32.vlgmr.msra.gmra.mrb[2].mxu1 %v1920_v38  ;;  %653 = vmatmul.mubr.f32.vlgmr.msra.gmra.mrb[6].mxu0 %v1920_v38 }
 0x2b6   :  { %1326 = vmatpush1.bf16.msra.mxu1 %v1325_v35  ;;  %1356 = vmatpush1.bf16.msra.mxu0 %v1355_v36  ;;  %v1388_v35 = vpack.c.bf16 %v1062_v33, %v1061_v0  ;;  %v1063_v36 = vld [vmem:[%s2164_s7 + $0x2a0] sm:$0xff] }
 0x2b7   :  { %1035 = vmatprep.mubr.msk.f32.mxu1 %vm382_vm4, %v1915_v34  ;;  %1058 = vmatprep.mubr.msk.f32.mxu0 %vm382_vm4, %v1915_v34  ;;  %v1391_v39 = vpack.c.bf16 %v1064_v37, %v1063_v36 }
 0x2b8   :  { %1327 = vmatprep.subr.bf16.mxu1 %v1445_v47  ;;  %1357 = vmatprep.subr.bf16.mxu0 %v1445_v47 }
 0x2ba   :  { %1329 = vmatpush1.bf16.msra.mxu1 %v1328_v42  ;;  %1359 = vmatpush1.bf16.msra.mxu0 %v1358_v43  ;;  %v1067_v42 = vld [vmem:[%s2164_s7 + $0x2c0] sm:$0xff]  ;;  %v1068_v43 = vld [vmem:[%s2164_s7 + $0x2c8] sm:$0xff] }
 0x2bb   :  { %1330 = vmatprep.subr.bf16.mxu1 %v1445_v47  ;;  %1360 = vmatprep.subr.bf16.mxu0 %v1445_v47  ;;  %v1397_v44 = vpack.c.bf16 %v1068_v43, %v1067_v42 }
 0x2be   :  { %1332 = vmatpush1.bf16.msra.mxu1 %v1331_v49  ;;  %1362 = vmatpush1.bf16.msra.mxu0 %v1361_v50  ;;  %v1071_v49 = vld [vmem:[%s2164_s7 + $0x2e0] sm:$0xff]  ;;  %v1072_v50 = vld [vmem:[%s2164_s7 + $0x2e8] sm:$0xff] }
 0x2bf   :  { %1333 = vmatprep.subr.bf16.mxu1 %v1445_v47  ;;  %1363 = vmatprep.subr.bf16.mxu0 %v1445_v47  ;;  %v1403_v51 = vpack.c.bf16 %v1072_v50, %v1071_v49 }
 0x2c2   :  { %1335 = vmatpush1.bf16.msra.mxu1 %v1334_v55  ;;  %1365 = vmatpush1.bf16.msra.mxu0 %v1364_v56  ;;  %v1075_v55 = vld [vmem:[%s2164_s7 + $0x300] sm:$0xff]  ;;  %v1076_v56 = vld [vmem:[%s2164_s7 + $0x308] sm:$0xff] }
 0x2c3   :  { %1336 = vmatprep.subr.bf16.mxu1 %v1445_v47  ;;  %1366 = vmatprep.subr.bf16.mxu0 %v1445_v47  ;;  %v1409_v57 = vpack.c.bf16 %v1076_v56, %v1075_v55 }
 0x2c6   :  { %1338 = vmatpush1.bf16.msra.mxu1 %v1337_v61  ;;  %1368 = vmatpush1.bf16.msra.mxu0 %v1367_v62  ;;  %v988_v61 = vld [vmem:[%s2165_s8] ss:$0 sm:$0xff]  ;;  %v1011_v62 = vld [vmem:[%s2165_s8 + $0x1] ss:$0 sm:$0xff] }
 0x2c7   :  { %1339 = vmatprep.subr.bf16.mxu1 %v1445_v47  ;;  %1369 = vmatprep.subr.bf16.mxu0 %v1445_v47 }
 0x2ca   :  { %1341 = vmatpush1.bf16.msra.mxu1 %v1340_v4  ;;  %1371 = vmatpush1.bf16.msra.mxu0 %v1370_v5 }
 0x2cb   :  { %1342 = vmatprep.subr.bf16.mxu1 %v1445_v47  ;;  %1372 = vmatprep.subr.bf16.mxu0 %v1445_v47 }
 0x2ce   :  { %1344 = vmatpush1.bf16.msra.mxu1 %v1343_v10  ;;  %1374 = vmatpush1.bf16.msra.mxu0 %v1373_v11 }
 0x2cf   :  { %1345 = vmatprep.subr.bf16.mxu1 %v1445_v47  ;;  %1375 = vmatprep.subr.bf16.mxu0 %v1445_v47 }
 0x2d2   :  { %1347 = vmatpush1.bf16.msra.mxu1 %v1346_v16  ;;  %1377 = vmatpush1.bf16.msra.mxu0 %v1376_v17 }
 0x2d3   :  { %1348 = vmatprep.subr.bf16.mxu1 %v1445_v47  ;;  %1378 = vmatprep.subr.bf16.mxu0 %v1445_v47 }
 0x2d6   :  { %1350 = vmatpush1.bf16.msra.mxu1 %v1349_v22  ;;  %1380 = vmatpush1.bf16.msra.mxu0 %v1379_v23 }
 0x2d7   :  { %1351 = vmatprep.subr.bf16.mxu1 %v1445_v47  ;;  %1381 = vmatprep.subr.bf16.mxu0 %v1445_v47 }
 0x2da   :  { %1353 = vmatpush1.bf16.msra.mxu1 %v1352_v28  ;;  %1383 = vmatpush1.bf16.msra.mxu0 %v1382_v29 }
 0x2db   :  { %1384 = vmatprep.subr.bf16.mxu1 %v1445_v47 }
 0x2dd   :  { %752 = vmatmul.mubr.f32.vlgmr.msra.gmra.mrb[4].mxu1 %v1920_v38  ;;  %851 = vmatmul.mubr.f32.vlgmr.msra.gmra.mrb[8].mxu0 %v1920_v38 }
 0x2de   :  { %1386 = vmatpush1.bf16.msra.mxu1 %v1385_v32  ;;  %1081 = vmatprep.mubr.msk.f32.mxu1 %vm382_vm4, %v1915_v34  ;;  %v1066_v34 = vld [vmem:[%s2164_s7 + $0x2b8] sm:$0xff] }
 0x2df   :  { %1387 = vmatprep.subr.bf16.mxu1 %v1445_v47  ;;  %v1394_v41 = vpack.c.bf16 %v1066_v34, %v1065_v40 }
 0x2e2   :  { %1389 = vmatpush1.bf16.msra.mxu1 %v1388_v35 }
 0x2e3   :  { %1390 = vmatprep.subr.bf16.mxu1 %v1445_v47 }
 0x2e6   :  { %1392 = vmatpush1.bf16.msra.mxu1 %v1391_v39 }
 0x2e7   :  { %1393 = vmatprep.subr.bf16.mxu1 %v1445_v47 }
 0x2ea   :  { %1395 = vmatpush1.bf16.msra.mxu1 %v1394_v41 }
 0x2eb   :  { %1396 = vmatprep.subr.bf16.mxu1 %v1445_v47 }
 0x2ee   :  { %1398 = vmatpush1.bf16.msra.mxu1 %v1397_v44 }
 0x2ef   :  { %1399 = vmatprep.subr.bf16.mxu1 %v1445_v47 }
 0x2f2   :  { %1401 = vmatpush1.bf16.msra.mxu1 %v1400_v48 }
 0x2f3   :  { %1402 = vmatprep.subr.bf16.mxu1 %v1445_v47 }
 0x2f6   :  { %1404 = vmatpush1.bf16.msra.mxu1 %v1403_v51 }
 0x2f7   :  { %1405 = vmatprep.subr.bf16.mxu1 %v1445_v47 }
 0x2fa   :  { %1407 = vmatpush1.bf16.msra.mxu1 %v1406_v54 }
 0x2fb   :  { %1408 = vmatprep.subr.bf16.mxu1 %v1445_v47 }
 0x2fe   :  { %1410 = vmatpush1.bf16.msra.mxu1 %v1409_v57 }
 0x2ff   :  { %1411 = vmatprep.subr.bf16.mxu1 %v1445_v47  ;;  %v1034_v47 = vld [vmem:[%s2165_s8 + $0x2] ss:$0 sm:$0xff] }
 0x302   :  { %1413 = vmatpush1.bf16.msra.mxu1 %v1412_v60 }
 0x305   :  { %950 = vmatmul.mubr.f32.vlgmr.msra.gmra.mrb[6].mxu1 %v1920_v38  ;;  %v1057_v38 = vld [vmem:[%s2165_s8 + $0x3] ss:$0 sm:$0xff] }
 0x388   :  { %v555_v63 = vpop.f32.mrb[2].mxu1  ;;  %v654_v1 = vpop.f32.mrb[6].mxu0 }
 0x389   :  { %v556_v2 = vadd.f32 %v988_v61, %v555_v63  ;;  %v655_v3 = vadd.f32 %v1011_v62, %v654_v1  ;;  %v557_v4 = vpop.f32.mrb[3].mxu1  ;;  %v656_v5 = vpop.f32.mrb[7].mxu0 }
 0x38b   :  { %v955_v6 = vsub.f32 %v655_v3, %v556_v2 }
 0x3b0   :  { %v753_v7 = vpop.f32.mrb[4].mxu1  ;;  %v852_v8 = vpop.f32.mrb[8].mxu0 }
 0x3b1   :  { %v754_v9 = vadd.f32 %v1034_v47, %v753_v7  ;;  %v853_v10 = vadd.f32 %v1057_v38, %v852_v8  ;;  %v755_v11 = vpop.f32.mrb[5].mxu1  ;;  %v854_v12 = vpop.f32.mrb[9].mxu0 }
 0x3b3   :  { %v956_v13 = vsub.f32 %v754_v9, %v556_v2  ;;  %v957_v14 = vsub.f32 %v853_v10, %v556_v2 }
 0x3b5   :  { %v959_v15 = vmin.f32 %v955_v6, %v956_v13  ;;  %v960_v16 = vmax.f32 %v955_v6, %v956_v13 }
 0x3b7   :  { %v961_v17 = vmin.f32 %v960_v16, %v957_v14  ;;  %v962_v18 = vmax.f32 %v960_v16, %v957_v14 }
 0x3b9   :  { %v964_v19 = vmax.f32 %v959_v15, %v961_v17 }
 0x3d8   :  { %v951_v21 = vpop.f32.mrb[6].mxu1 }
 0x3d9   :  { %v952_v22 = vadd.f32 %v1080_v20, %v951_v21  ;;  %v953_v23 = vpop.f32.mrb[7].mxu1 }
 0x3db   :  { %v958_v24 = vsub.f32 %v952_v22, %v556_v2 }
 0x3dd   :  { %v963_v25 = vmin.f32 %v962_v18, %v958_v24 }
 0x3df   :  { %v965_v26 = vmax.f32 %v964_v19, %v963_v25 }
 0x3e1   :  { %v966_v27 = vmul.f32 1.5, %v965_v26 }
 0x3e3   :  { %v967_v28 = vsub.f32 %v556_v2, %v966_v27 }
 0x3e5   :  { %969 = vst.msk [vmem:[#allocation2] sm:$0x3] %vm968_vm5, %v967_v28 }
 0x3e6   :  { %1431 = shalt.err (!%p1428_p4)
}
 0x3e7   :  { %s1432_s17 = scalar_lea.hbm %s2166_s9, 32 }
 0x3e8   :  { %p1433_p5 = scmp.ne.s32.totalorder %s2166_s9, %s1432_s17  ;;  %p1436_p6 = scmp.lt.u32.totalorder %s1432_s17, %s2166_s9 }
 0x3ea   :  { %p1438_p7 = pnand %p1436_p6, %p1433_p5 }
 0x3ec   :  { %1441 = shalt.err (!%p1438_p7)
}
 0x3ed   :  { %979 = dma.vmem_to_hbm [thread:$0]  %s977_s15, 32, %s2166_s9, [#allocation3]  }
 0x3ee   :  { %1442 = dma.done.wait [#allocation3], 32  }
 0x3ef   :  { %1443 = vsyncadd [#allocation3], 4294967264 }
 0x3f0   :  { %983 = vsyncpa [#allocation3], 1 }

</bundles_post_ra>
